<compile_context>
chip_gen: v6e
topology: v6e:2x2x1
jax: 0.10.0
libtpu: 0.0.40
codegen_flags: <defaults>
</compile_context>

<pallas_src>
import functools

import jax
import jax.numpy as jnp
from jax.experimental import pallas as pl
from jax.experimental.pallas import tpu as pltpu

# Exact-division fallback for strict PyTorch parity tests (approx reciprocal
# introduces a tiny relative error; fine for inference).
APPROX_SOFTMAX_RECIPROCAL = True


# ------------------------------ small helpers -------------------------------

@functools.lru_cache(maxsize=None)
def _vmem_limit_bytes():
    """Per-generation scoped-VMEM budget (raise on v5e/v6e, ~48 MiB on v7x)."""
    try:
        cap = pltpu.get_tpu_info().vmem_capacity_bytes
        return int(min(cap * 3 // 4, 100 * 1024 * 1024))
    except Exception:
        return 32 * 1024 * 1024   # conservative fallback, safe on all chips


def _round_up(x, m):
    return (x + m - 1) // m * m


def _row_tiling(m, max_tile=512):
    """Pick (row_tile, padded_M): aligned tiles, never one giant tile."""
    for t in (1024, 512, 256, 128):
        if t <= max_tile and m % t == 0:
            return t, m
    if m <= max_tile:
        mp = _round_up(m, 8)          # sublane-align small extents
        return mp, mp
    return 256, _round_up(m, 256)     # pad + keep the pipeline deep


def _col_tile(n):
    for t in (2048, 1024, 512, 256, 128):
        if n % t == 0:
            return t
    # TODO(synk): pad vocab to a multiple of 128 instead of a full-extent tile.
    return n


def _pad_rows(a, m_pad):
    m = a.shape[0]
    return a if m == m_pad else jnp.pad(a, ((0, m_pad - m), (0, 0)))


def _maybe_unpad(a, m):
    return a if a.shape[0] == m else a[:m]


def _layernorm(x, gamma, beta, eps=1e-5):
    # x: (M, C) f32, gamma/beta: (1, C) f32
    mean = jnp.mean(x, axis=-1, keepdims=True)
    var = jnp.mean((x - mean) ** 2, axis=-1, keepdims=True)
    return (x - mean) * jax.lax.rsqrt(var + eps) * gamma + beta


# --------------------------------- kernels ----------------------------------

def ln_qkv_kernel(x_ref, g_ref, b_ref, wqkv_ref, qkv_ref):
    """ln1(x) followed by the fused (C, 3C) Q|K|V projection (no bias)."""
    x = x_ref[...].astype(jnp.float32)                       # (TM, C)
    xn = _layernorm(x, g_ref[...], b_ref[...])
    qkv = jnp.dot(xn.astype(jnp.bfloat16), wqkv_ref[...],
                  preferred_element_type=jnp.float32)        # (TM, 3C) f32 acc
    qkv_ref[...] = qkv.astype(qkv_ref.dtype)


def attention_kernel(qkv_ref, o_ref, *, n_head):
    """Causal multi-head attention for one batch element.

    Heads are sliced directly from the fused (T, 3C) QKV slab in-kernel
    (no XLA transposes) and the merged (T, C) output is written with a single
    lane-dense store.
    """
    qkv = qkv_ref[0]                                          # (T, 3C) bf16
    T, three_c = qkv.shape
    C = three_c // 3
    hs = C // n_head
    scale = float(hs) ** -0.5

    row = jax.lax.broadcasted_iota(jnp.int32, (T, T), 0)
    col = jax.lax.broadcasted_iota(jnp.int32, (T, T), 1)
    causal = row >= col

    outs = []
    for h in range(n_head):
        q = qkv[:, h * hs:(h + 1) * hs]                       # (T, hs)
        k = qkv[:, C + h * hs:C + (h + 1) * hs]               # (T, hs)
        v = qkv[:, 2 * C + h * hs:2 * C + (h + 1) * hs]       # (T, hs)

        # einsum 'qd,kd->qk': contract head dims, no K transpose materialized.
        s = jax.lax.dot_general(q, k, (((1,), (1,)), ((), ())),
                                preferred_element_type=jnp.float32) * scale
        s = jnp.where(causal, s, -jnp.inf)                    # causal mask

        m = jnp.max(s, axis=-1, keepdims=True)
        p = jnp.exp(s - m)
        denom = jnp.sum(p, axis=-1, keepdims=True)
        if APPROX_SOFTMAX_RECIPROCAL:
            p = p * pl.reciprocal(denom, approx=True)         # EUP slot
        else:
            p = p / denom
        # NOTE: dropout on attention weights is identity (inference).

        outs.append(jnp.dot(p.astype(jnp.bfloat16), v,
                            preferred_element_type=jnp.float32))   # (T, hs)

    # Single lane-dense (T, C) store == torch.cat(heads, dim=-1).
    o_ref[0] = jnp.concatenate(outs, axis=-1).astype(o_ref.dtype)


def proj_ffn_kernel(att_ref, x_ref, wp_ref, bp_ref,
                    ln2g_ref, ln2b_ref, w1_ref, b1_ref, w2_ref, b2_ref,
                    *rest, final_ln):
    """x += proj(att); x += FFN(ln2(x)); optionally fuse ln_f on the last block."""
    if final_ln:
        lnfg_ref, lnfb_ref, o_ref = rest
    else:
        (o_ref,) = rest

    att = att_ref[...]                                        # (TM, C) bf16
    x = x_ref[...].astype(jnp.float32)                        # (TM, C) f32

    proj = jnp.dot(att, wp_ref[...],
                   preferred_element_type=jnp.float32) + bp_ref[...]
    x = x + proj                                              # residual 1

    xn = _layernorm(x, ln2g_ref[...], ln2b_ref[...])
    h = jnp.dot(xn.astype(jnp.bfloat16), w1_ref[...],
                preferred_element_type=jnp.float32) + b1_ref[...]
    h = jnp.maximum(h, 0.0)                                   # ReLU
    ff = jnp.dot(h.astype(jnp.bfloat16), w2_ref[...],
                 preferred_element_type=jnp.float32) + b2_ref[...]
    x = x + ff                                                # residual 2
    # NOTE: FFN / projection dropout is identity (inference).

    if final_ln:                                              # hoisted ln_f
        x = _layernorm(x, lnfg_ref[...], lnfb_ref[...])
    o_ref[...] = x.astype(o_ref.dtype)


def lm_head_kernel(xn_ref, w_ref, bias_ref, o_ref):
    """One (row tile, vocab tile) of the lm_head on pre-normalized bf16 x."""
    logits = jnp.dot(xn_ref[...], w_ref[...],
                     preferred_element_type=jnp.float32) + bias_ref[...]
    o_ref[...] = logits.astype(o_ref.dtype)


# -------------------------------- wrappers ----------------------------------

def run_ln_qkv(x2d, ln_g, ln_b, wqkv):
    M, C = x2d.shape
    N = wqkv.shape[1]
    tm, m_pad = _row_tiling(M)
    xp = _pad_rows(x2d, m_pad)
    full = lambda shape: pl.BlockSpec(shape, lambda i: (0,) * len(shape))
    out = pl.pallas_call(
        ln_qkv_kernel,
        out_shape=jax.ShapeDtypeStruct((m_pad, N), jnp.bfloat16),
        grid=(m_pad // tm,),
        in_specs=[
            pl.BlockSpec((tm, C), lambda i: (i, 0)),
            full((1, C)), full((1, C)),
            full((C, N)),
        ],
        out_specs=pl.BlockSpec((tm, N), lambda i: (i, 0)),
        compiler_params=pltpu.CompilerParams(
            dimension_semantics=("parallel",),
            vmem_limit_bytes=_vmem_limit_bytes()),
    )(xp, ln_g, ln_b, wqkv)
    return _maybe_unpad(out, M)


def run_attention(qkv3, n_head):
    B, T, three_c = qkv3.shape
    C = three_c // 3
    return pl.pallas_call(
        functools.partial(attention_kernel, n_head=n_head),
        out_shape=jax.ShapeDtypeStruct((B, T, C), jnp.bfloat16),
        grid=(B,),
        in_specs=[pl.BlockSpec((1, T, three_c), lambda b: (b, 0, 0))],
        out_specs=pl.BlockSpec((1, T, C), lambda b: (b, 0, 0)),
        compiler_params=pltpu.CompilerParams(
            dimension_semantics=("parallel",),
            vmem_limit_bytes=_vmem_limit_bytes()),
    )(qkv3)


def run_proj_ffn(att2d, x2d, p, lnf=None):
    M, C = x2d.shape
    Hid = p["w1"].shape[1]
    tm, m_pad = _row_tiling(M)
    attp = _pad_rows(att2d, m_pad)
    xp = _pad_rows(x2d, m_pad)
    full = lambda shape: pl.BlockSpec(shape, lambda i: (0,) * len(shape))

    in_specs = [
        pl.BlockSpec((tm, C), lambda i: (i, 0)),   # att (bf16)
        pl.BlockSpec((tm, C), lambda i: (i, 0)),   # residual x (bf16)
        full((C, C)), full((1, C)),                # Wproj, bproj
        full((1, C)), full((1, C)),                # ln2 gamma/beta
        full((C, Hid)), full((1, Hid)),            # W1, b1
        full((Hid, C)), full((1, C)),              # W2, b2
    ]
    args = [attp, xp, p["wproj"], p["bproj"], p["ln2_g"], p["ln2_b"],
            p["w1"], p["b1"], p["w2"], p["b2"]]
    final_ln = lnf is not None
    if final_ln:                                    # fuse ln_f into last block
        in_specs += [full((1, C)), full((1, C))]
        args += [lnf[0], lnf[1]]

    out = pl.pallas_call(
        functools.partial(proj_ffn_kernel, final_ln=final_ln),
        out_shape=jax.ShapeDtypeStruct((m_pad, C), jnp.bfloat16),
        grid=(m_pad // tm,),
        in_specs=in_specs,
        out_specs=pl.BlockSpec((tm, C), lambda i: (i, 0)),
        compiler_params=pltpu.CompilerParams(
            dimension_semantics=("parallel",),
            vmem_limit_bytes=_vmem_limit_bytes()),
    )(*args)
    return _maybe_unpad(out, M)


def run_lm_head(xn2d, w_lm, b_lm):
    M, C = xn2d.shape
    V = w_lm.shape[1]
    tm, m_pad = _row_tiling(M, max_tile=1024)
    tv = _col_tile(V)
    xp = _pad_rows(xn2d, m_pad)
    out = pl.pallas_call(
        lm_head_kernel,
        out_shape=jax.ShapeDtypeStruct((m_pad, V), jnp.float32),
        # Vocab axis outermost: each (C, tv) weight slab is DMA'd once and
        # reused across every row tile (the weight dominates HBM traffic).
        grid=(V // tv, m_pad // tm),
        in_specs=[
            pl.BlockSpec((tm, C), lambda j, i: (i, 0)),
            pl.BlockSpec((C, tv), lambda j, i: (0, j)),
            pl.BlockSpec((1, tv), lambda j, i: (0, j)),
        ],
        out_specs=pl.BlockSpec((tm, tv), lambda j, i: (i, j)),
        compiler_params=pltpu.CompilerParams(
            dimension_semantics=("parallel", "parallel"),
            vmem_limit_bytes=_vmem_limit_bytes()),
    )(xp, w_lm, b_lm)
    return _maybe_unpad(out, M)


# ------------------------------ parameter init ------------------------------

def init_params(key, vocab_size, n_embd, block_size, n_head, n_layer):
    assert n_embd % n_head == 0, "n_embd must be divisible by n_head"
    std = 0.02
    keys = iter(jax.random.split(key, 3 + 4 * n_layer))
    nxt = lambda: next(keys)

    def normal(k, shape, dtype):
        return (std * jax.random.normal(k, shape, dtype=jnp.float32)).astype(dtype)

    hidden = 4 * n_embd
    params = {
        "tok_emb": normal(nxt(), (vocab_size, n_embd), jnp.float32),
        "pos_emb": normal(nxt(), (block_size, n_embd), jnp.float32),
        "lnf_g": jnp.ones((1, n_embd), jnp.float32),
        "lnf_b": jnp.zeros((1, n_embd), jnp.float32),
        # MXU-operand weights stored in bf16 (f32 accumulation in-kernel).
        "w_lm": normal(nxt(), (n_embd, vocab_size), jnp.bfloat16),
        "b_lm": jnp.zeros((1, vocab_size), jnp.float32),
        "blocks": [],
    }
    for _ in range(n_layer):
        params["blocks"].append({
            "ln1_g": jnp.ones((1, n_embd), jnp.float32),
            "ln1_b": jnp.zeros((1, n_embd), jnp.float32),
            # Fused Q|K|V projection: columns ordered [Wq | Wk | Wv], each head
            # occupying a contiguous head_size-wide slab inside its block.
            "wqkv": normal(nxt(), (n_embd, 3 * n_embd), jnp.bfloat16),
            "wproj": normal(nxt(), (n_embd, n_embd), jnp.bfloat16),
            "bproj": jnp.zeros((1, n_embd), jnp.float32),
            "ln2_g": jnp.ones((1, n_embd), jnp.float32),
            "ln2_b": jnp.zeros((1, n_embd), jnp.float32),
            "w1": normal(nxt(), (n_embd, hidden), jnp.bfloat16),
            "b1": jnp.zeros((1, hidden), jnp.float32),
            "w2": normal(nxt(), (hidden, n_embd), jnp.bfloat16),
            "b2": jnp.zeros((1, n_embd), jnp.float32),
        })
    return params


# --------------------------------- forward ----------------------------------

def transformer_forward(idx, params, *, n_head):
    B, T = idx.shape
    C = params["tok_emb"].shape[1]
    n_layer = len(params["blocks"])

    # Embedding gather + positional add (plain-JAX glue); residual stream bf16.
    tok = jnp.take(params["tok_emb"], idx, axis=0)            # (B, T, C)
    pos = params["pos_emb"][:T]                               # (T, C)
    x = (tok + pos[None, :, :]).astype(jnp.bfloat16).reshape(B * T, C)

    for li, blk in enumerate(params["blocks"]):
        # ln1 + fused QKV projection over flattened rows.
        qkv = run_ln_qkv(x, blk["ln1_g"], blk["ln1_b"], blk["wqkv"])  # (BT, 3C)

        # Free leading-dim split; heads are sliced inside the attention kernel.
        att = run_attention(qkv.reshape(B, T, 3 * C), n_head)         # (B, T, C)

        # Output projection + residual, ln2 + FFN + residual.
        # The last block also applies ln_f so the lm_head reads bf16 normalized x.
        lnf = (params["lnf_g"], params["lnf_b"]) if li == n_layer - 1 else None
        x = run_proj_ffn(att.reshape(B * T, C), x, blk, lnf=lnf)      # (BT, C)

    logits = run_lm_head(x, params["w_lm"], params["b_lm"])           # (BT, V)
    return logits.reshape(B, T, -1)


# ----------------------------------- main ------------------------------------

if __name__ == "__main__":
    vocab_size = 128
    n_embd = 32
    block_size = 8
    n_head = 4
    n_layer = 2

    B, T = 2, 8

    key = jax.random.PRNGKey(0)
    k_params, k_idx = jax.random.split(key)
    params = init_params(k_params, vocab_size, n_embd, block_size, n_head, n_layer)
    idx = jax.random.randint(k_idx, (B, T), 0, vocab_size, dtype=jnp.int32)

    fwd = jax.jit(functools.partial(transformer_forward, n_head=n_head))
    logits = jax.block_until_ready(fwd(idx, params))
    assert logits.shape == (B, T, vocab_size)
    assert bool(jnp.all(jnp.isfinite(logits)))
    print("KERNEL_OK")
</pallas_src>

<mosaic_0001>
module attributes {stable_mosaic.version = 11 : i64} {
  func.func @ln_qkv_kernel(%arg0: i32, %arg1: memref<16x32xbf16, #tpu.memory_space<vmem>>, %arg2: memref<1x32xf32, #tpu.memory_space<vmem>>, %arg3: memref<1x32xf32, #tpu.memory_space<vmem>>, %arg4: memref<32x96xbf16, #tpu.memory_space<vmem>>, %arg5: memref<16x96xbf16, #tpu.memory_space<vmem>>) attributes {dimension_semantics = [#tpu.dimension_semantics<parallel>], iteration_bounds = array<i64: 1>, scalar_prefetch = 0 : i64, scratch_operands = 0 : i64, tpu.core_type = #tpu.core_type<tc>, window_params = [{transform_indices = @transform_0, window_bounds = array<i64: 16, 32>}, {pipeline_mode = #tpu.pipeline_mode<synchronous>, transform_indices = @transform_1, window_bounds = array<i64: 1, 32>}, {pipeline_mode = #tpu.pipeline_mode<synchronous>, transform_indices = @transform_2, window_bounds = array<i64: 1, 32>}, {pipeline_mode = #tpu.pipeline_mode<synchronous>, transform_indices = @transform_3, window_bounds = array<i64: 32, 96>}, {transform_indices = @transform_4, window_bounds = array<i64: 16, 96>}]} {
    %c0 = arith.constant 0 : index
    %c0_0 = arith.constant 0 : index
    %0 = vector.load %arg1[%c0, %c0_0] : memref<16x32xbf16, #tpu.memory_space<vmem>>, vector<16x32xbf16>
    %1 = arith.extf %0 : vector<16x32xbf16> to vector<16x32xf32>
    %c0_1 = arith.constant 0 : index
    %c0_2 = arith.constant 0 : index
    %2 = vector.load %arg2[%c0_1, %c0_2] : memref<1x32xf32, #tpu.memory_space<vmem>>, vector<1x32xf32>
    %c0_3 = arith.constant 0 : index
    %c0_4 = arith.constant 0 : index
    %3 = vector.load %arg3[%c0_3, %c0_4] : memref<1x32xf32, #tpu.memory_space<vmem>>, vector<1x32xf32>
    %cst = arith.constant dense<0.000000e+00> : vector<16xf32>
    %4 = vector.multi_reduction <add>, %1, %cst [1] : vector<16x32xf32> to vector<16xf32>
    %5 = vector.shape_cast %4 : vector<16xf32> to vector<16x1xf32>
    %cst_5 = arith.constant 3.200000e+01 : f32
    %6 = vector.broadcast %cst_5 : f32 to vector<16x1xf32>
    %7 = arith.divf %5, %6 : vector<16x1xf32>
    %8 = vector.broadcast %7 : vector<16x1xf32> to vector<16x32xf32>
    %9 = arith.subf %1, %8 : vector<16x32xf32>
    %10 = arith.mulf %9, %9 : vector<16x32xf32>
    %cst_6 = arith.constant dense<0.000000e+00> : vector<16xf32>
    %11 = vector.multi_reduction <add>, %10, %cst_6 [1] : vector<16x32xf32> to vector<16xf32>
    %12 = vector.shape_cast %11 : vector<16xf32> to vector<16x1xf32>
    %cst_7 = arith.constant 3.200000e+01 : f32
    %13 = vector.broadcast %cst_7 : f32 to vector<16x1xf32>
    %14 = arith.divf %12, %13 : vector<16x1xf32>
    %15 = vector.broadcast %7 : vector<16x1xf32> to vector<16x32xf32>
    %16 = arith.subf %1, %15 : vector<16x32xf32>
    %cst_8 = arith.constant 9.99999974E-6 : f32
    %17 = vector.broadcast %cst_8 : f32 to vector<16x1xf32>
    %18 = arith.addf %14, %17 : vector<16x1xf32>
    %19 = math.rsqrt %18 : vector<16x1xf32>
    %20 = vector.broadcast %19 : vector<16x1xf32> to vector<16x32xf32>
    %21 = arith.mulf %16, %20 : vector<16x32xf32>
    %22 = vector.broadcast %2 : vector<1x32xf32> to vector<16x32xf32>
    %23 = arith.mulf %21, %22 : vector<16x32xf32>
    %24 = vector.broadcast %3 : vector<1x32xf32> to vector<16x32xf32>
    %25 = arith.addf %23, %24 : vector<16x32xf32>
    %26 = arith.truncf %25 : vector<16x32xf32> to vector<16x32xbf16>
    %c0_9 = arith.constant 0 : index
    %c0_10 = arith.constant 0 : index
    %27 = vector.load %arg4[%c0_9, %c0_10] : memref<32x96xbf16, #tpu.memory_space<vmem>>, vector<32x96xbf16>
    %cst_11 = arith.constant dense<0.000000e+00> : vector<16x96xf32>
    %28 = tpu.matmul %26, %27, %cst_11 {dimension_numbers = #tpu.dot_dimension_numbers<[1], [0], [0], [1], [0, 0, 1, 1], [], []>} : vector<16x32xbf16>, vector<32x96xbf16>, vector<16x96xf32> -> vector<16x96xf32>
    %29 = arith.truncf %28 : vector<16x96xf32> to vector<16x96xbf16>
    %c0_12 = arith.constant 0 : index
    %c0_13 = arith.constant 0 : index
    %30 = vector.load %arg5[%c0_12, %c0_13] : memref<16x96xbf16, #tpu.memory_space<vmem>>, vector<16x96xbf16>
    tpu.vector_store %arg5[%c0_12, %c0_13], %29 {strides = array<i32>} : memref<16x96xbf16, #tpu.memory_space<vmem>>, vector<16x96xbf16>,
    return
  }
  func.func @transform_0(%arg0: i32) -> (i32, i32) {
    %c0_i32 = arith.constant 0 : i32
    %c0_i32_0 = arith.constant 0 : i32
    return %arg0, %c0_i32 : i32, i32
  }
  func.func @transform_1(%arg0: i32) -> (i32, i32) {
    %c0_i32 = arith.constant 0 : i32
    %c0_i32_0 = arith.constant 0 : i32
    %c0_i32_1 = arith.constant 0 : i32
    return %c0_i32, %c0_i32_0 : i32, i32
  }
  func.func @transform_2(%arg0: i32) -> (i32, i32) {
    %c0_i32 = arith.constant 0 : i32
    %c0_i32_0 = arith.constant 0 : i32
    %c0_i32_1 = arith.constant 0 : i32
    return %c0_i32, %c0_i32_0 : i32, i32
  }
  func.func @transform_3(%arg0: i32) -> (i32, i32) {
    %c0_i32 = arith.constant 0 : i32
    %c0_i32_0 = arith.constant 0 : i32
    %c0_i32_1 = arith.constant 0 : i32
    return %c0_i32, %c0_i32_0 : i32, i32
  }
  func.func @transform_4(%arg0: i32) -> (i32, i32) {
    %c0_i32 = arith.constant 0 : i32
    %c0_i32_0 = arith.constant 0 : i32
    return %arg0, %c0_i32 : i32, i32
  }
}

module attributes {stable_mosaic.version = 11 : i64} {
  func.func @proj_ffn_kernel(%arg0: i32, %arg1: memref<16x32xbf16, #tpu.memory_space<vmem>>, %arg2: memref<16x32xbf16, #tpu.memory_space<vmem>>, %arg3: memref<32x32xbf16, #tpu.memory_space<vmem>>, %arg4: memref<1x32xf32, #tpu.memory_space<vmem>>, %arg5: memref<1x32xf32, #tpu.memory_space<vmem>>, %arg6: memref<1x32xf32, #tpu.memory_space<vmem>>, %arg7: memref<32x128xbf16, #tpu.memory_space<vmem>>, %arg8: memref<1x128xf32, #tpu.memory_space<vmem>>, %arg9: memref<128x32xbf16, #tpu.memory_space<vmem>>, %arg10: memref<1x32xf32, #tpu.memory_space<vmem>>, %arg11: memref<16x32xbf16, #tpu.memory_space<vmem>>) attributes {dimension_semantics = [#tpu.dimension_semantics<parallel>], iteration_bounds = array<i64: 1>, scalar_prefetch = 0 : i64, scratch_operands = 0 : i64, tpu.core_type = #tpu.core_type<tc>, window_params = [{transform_indices = @transform_0, window_bounds = array<i64: 16, 32>}, {transform_indices = @transform_1, window_bounds = array<i64: 16, 32>}, {pipeline_mode = #tpu.pipeline_mode<synchronous>, transform_indices = @transform_2, window_bounds = array<i64: 32, 32>}, {pipeline_mode = #tpu.pipeline_mode<synchronous>, transform_indices = @transform_3, window_bounds = array<i64: 1, 32>}, {pipeline_mode = #tpu.pipeline_mode<synchronous>, transform_indices = @transform_4, window_bounds = array<i64: 1, 32>}, {pipeline_mode = #tpu.pipeline_mode<synchronous>, transform_indices = @transform_5, window_bounds = array<i64: 1, 32>}, {pipeline_mode = #tpu.pipeline_mode<synchronous>, transform_indices = @transform_6, window_bounds = array<i64: 32, 128>}, {pipeline_mode = #tpu.pipeline_mode<synchronous>, transform_indices = @transform_7, window_bounds = array<i64: 1, 128>}, {pipeline_mode = #tpu.pipeline_mode<synchronous>, transform_indices = @transform_8, window_bounds = array<i64: 128, 32>}, {pipeline_mode = #tpu.pipeline_mode<synchronous>, transform_indices = @transform_9, window_bounds = array<i64: 1, 32>}, {transform_indices = @transform_10, window_bounds = array<i64: 16, 32>}]} {
    %c0 = arith.constant 0 : index
    %c0_0 = arith.constant 0 : index
    %0 = vector.load %arg1[%c0, %c0_0] : memref<16x32xbf16, #tpu.memory_space<vmem>>, vector<16x32xbf16>
    %c0_1 = arith.constant 0 : index
    %c0_2 = arith.constant 0 : index
    %1 = vector.load %arg2[%c0_1, %c0_2] : memref<16x32xbf16, #tpu.memory_space<vmem>>, vector<16x32xbf16>
    %2 = arith.extf %1 : vector<16x32xbf16> to vector<16x32xf32>
    %c0_3 = arith.constant 0 : index
    %c0_4 = arith.constant 0 : index
    %3 = vector.load %arg3[%c0_3, %c0_4] : memref<32x32xbf16, #tpu.memory_space<vmem>>, vector<32x32xbf16>
    %cst = arith.constant dense<0.000000e+00> : vector<16x32xf32>
    %4 = tpu.matmul %0, %3, %cst {dimension_numbers = #tpu.dot_dimension_numbers<[1], [0], [0], [1], [0, 0, 1, 1], [], []>} : vector<16x32xbf16>, vector<32x32xbf16>, vector<16x32xf32> -> vector<16x32xf32>
    %c0_5 = arith.constant 0 : index
    %c0_6 = arith.constant 0 : index
    %5 = vector.load %arg4[%c0_5, %c0_6] : memref<1x32xf32, #tpu.memory_space<vmem>>, vector<1x32xf32>
    %6 = vector.broadcast %5 : vector<1x32xf32> to vector<16x32xf32>
    %7 = arith.addf %4, %6 : vector<16x32xf32>
    %8 = arith.addf %2, %7 : vector<16x32xf32>
    %c0_7 = arith.constant 0 : index
    %c0_8 = arith.constant 0 : index
    %9 = vector.load %arg5[%c0_7, %c0_8] : memref<1x32xf32, #tpu.memory_space<vmem>>, vector<1x32xf32>
    %c0_9 = arith.constant 0 : index
    %c0_10 = arith.constant 0 : index
    %10 = vector.load %arg6[%c0_9, %c0_10] : memref<1x32xf32, #tpu.memory_space<vmem>>, vector<1x32xf32>
    %cst_11 = arith.constant dense<0.000000e+00> : vector<16xf32>
    %11 = vector.multi_reduction <add>, %8, %cst_11 [1] : vector<16x32xf32> to vector<16xf32>
    %12 = vector.shape_cast %11 : vector<16xf32> to vector<16x1xf32>
    %cst_12 = arith.constant 3.200000e+01 : f32
    %13 = vector.broadcast %cst_12 : f32 to vector<16x1xf32>
    %14 = arith.divf %12, %13 : vector<16x1xf32>
    %15 = vector.broadcast %14 : vector<16x1xf32> to vector<16x32xf32>
    %16 = arith.subf %8, %15 : vector<16x32xf32>
    %17 = arith.mulf %16, %16 : vector<16x32xf32>
    %cst_13 = arith.constant dense<0.000000e+00> : vector<16xf32>
    %18 = vector.multi_reduction <add>, %17, %cst_13 [1] : vector<16x32xf32> to vector<16xf32>
    %19 = vector.shape_cast %18 : vector<16xf32> to vector<16x1xf32>
    %cst_14 = arith.constant 3.200000e+01 : f32
    %20 = vector.broadcast %cst_14 : f32 to vector<16x1xf32>
    %21 = arith.divf %19, %20 : vector<16x1xf32>
    %22 = vector.broadcast %14 : vector<16x1xf32> to vector<16x32xf32>
    %23 = arith.subf %8, %22 : vector<16x32xf32>
    %cst_15 = arith.constant 9.99999974E-6 : f32
    %24 = vector.broadcast %cst_15 : f32 to vector<16x1xf32>
    %25 = arith.addf %21, %24 : vector<16x1xf32>
    %26 = math.rsqrt %25 : vector<16x1xf32>
    %27 = vector.broadcast %26 : vector<16x1xf32> to vector<16x32xf32>
    %28 = arith.mulf %23, %27 : vector<16x32xf32>
    %29 = vector.broadcast %9 : vector<1x32xf32> to vector<16x32xf32>
    %30 = arith.mulf %28, %29 : vector<16x32xf32>
    %31 = vector.broadcast %10 : vector<1x32xf32> to vector<16x32xf32>
    %32 = arith.addf %30, %31 : vector<16x32xf32>
    %33 = arith.truncf %32 : vector<16x32xf32> to vector<16x32xbf16>
    %c0_16 = arith.constant 0 : index
    %c0_17 = arith.constant 0 : index
    %34 = vector.load %arg7[%c0_16, %c0_17] : memref<32x128xbf16, #tpu.memory_space<vmem>>, vector<32x128xbf16>
    %cst_18 = arith.constant dense<0.000000e+00> : vector<16x128xf32>
    %35 = tpu.matmul %33, %34, %cst_18 {dimension_numbers = #tpu.dot_dimension_numbers<[1], [0], [0], [1], [0, 0, 1, 1], [], []>} : vector<16x32xbf16>, vector<32x128xbf16>, vector<16x128xf32> -> vector<16x128xf32>
    %c0_19 = arith.constant 0 : index
    %c0_20 = arith.constant 0 : index
    %36 = vector.load %arg8[%c0_19, %c0_20] : memref<1x128xf32, #tpu.memory_space<vmem>>, vector<1x128xf32>
    %37 = vector.broadcast %36 : vector<1x128xf32> to vector<16x128xf32>
    %38 = arith.addf %35, %37 : vector<16x128xf32>
    %cst_21 = arith.constant 0.000000e+00 : f32
    %39 = vector.broadcast %cst_21 : f32 to vector<16x128xf32>
    %40 = arith.maximumf %38, %39 : vector<16x128xf32>
    %41 = arith.truncf %40 : vector<16x128xf32> to vector<16x128xbf16>
    %c0_22 = arith.constant 0 : index
    %c0_23 = arith.constant 0 : index
    %42 = vector.load %arg9[%c0_22, %c0_23] : memref<128x32xbf16, #tpu.memory_space<vmem>>, vector<128x32xbf16>
    %cst_24 = arith.constant dense<0.000000e+00> : vector<16x32xf32>
    %43 = tpu.matmul %41, %42, %cst_24 {dimension_numbers = #tpu.dot_dimension_numbers<[1], [0], [0], [1], [0, 0, 1, 1], [], []>} : vector<16x128xbf16>, vector<128x32xbf16>, vector<16x32xf32> -> vector<16x32xf32>
    %c0_25 = arith.constant 0 : index
    %c0_26 = arith.constant 0 : index
    %44 = vector.load %arg10[%c0_25, %c0_26] : memref<1x32xf32, #tpu.memory_space<vmem>>, vector<1x32xf32>
    %45 = vector.broadcast %44 : vector<1x32xf32> to vector<16x32xf32>
    %46 = arith.addf %43, %45 : vector<16x32xf32>
    %47 = arith.addf %8, %46 : vector<16x32xf32>
    %48 = arith.truncf %47 : vector<16x32xf32> to vector<16x32xbf16>
    %c0_27 = arith.constant 0 : index
    %c0_28 = arith.constant 0 : index
    %49 = vector.load %arg11[%c0_27, %c0_28] : memref<16x32xbf16, #tpu.memory_space<vmem>>, vector<16x32xbf16>
    tpu.vector_store %arg11[%c0_27, %c0_28], %48 {strides = array<i32>} : memref<16x32xbf16, #tpu.memory_space<vmem>>, vector<16x32xbf16>,
    return
  }
  func.func @transform_0(%arg0: i32) -> (i32, i32) {
    %c0_i32 = arith.constant 0 : i32
    %c0_i32_0 = arith.constant 0 : i32
    return %arg0, %c0_i32 : i32, i32
  }
  func.func @transform_1(%arg0: i32) -> (i32, i32) {
    %c0_i32 = arith.constant 0 : i32
    %c0_i32_0 = arith.constant 0 : i32
    return %arg0, %c0_i32 : i32, i32
  }
  func.func @transform_2(%arg0: i32) -> (i32, i32) {
    %c0_i32 = arith.constant 0 : i32
    %c0_i32_0 = arith.constant 0 : i32
    %c0_i32_1 = arith.constant 0 : i32
    return %c0_i32, %c0_i32_0 : i32, i32
  }
  func.func @transform_3(%arg0: i32) -> (i32, i32) {
    %c0_i32 = arith.constant 0 : i32
    %c0_i32_0 = arith.constant 0 : i32
    %c0_i32_1 = arith.constant 0 : i32
    return %c0_i32, %c0_i32_0 : i32, i32
  }
  func.func @transform_4(%arg0: i32) -> (i32, i32) {
    %c0_i32 = arith.constant 0 : i32
    %c0_i32_0 = arith.constant 0 : i32
    %c0_i32_1 = arith.constant 0 : i32
    return %c0_i32, %c0_i32_0 : i32, i32
  }
  func.func @transform_5(%arg0: i32) -> (i32, i32) {
    %c0_i32 = arith.constant 0 : i32
    %c0_i32_0 = arith.constant 0 : i32
    %c0_i32_1 = arith.constant 0 : i32
    return %c0_i32, %c0_i32_0 : i32, i32
  }
  func.func @transform_6(%arg0: i32) -> (i32, i32) {
    %c0_i32 = arith.constant 0 : i32
    %c0_i32_0 = arith.constant 0 : i32
    %c0_i32_1 = arith.constant 0 : i32
    return %c0_i32, %c0_i32_0 : i32, i32
  }
  func.func @transform_7(%arg0: i32) -> (i32, i32) {
    %c0_i32 = arith.constant 0 : i32
    %c0_i32_0 = arith.constant 0 : i32
    %c0_i32_1 = arith.constant 0 : i32
    return %c0_i32, %c0_i32_0 : i32, i32
  }
  func.func @transform_8(%arg0: i32) -> (i32, i32) {
    %c0_i32 = arith.constant 0 : i32
    %c0_i32_0 = arith.constant 0 : i32
    %c0_i32_1 = arith.constant 0 : i32
    return %c0_i32, %c0_i32_0 : i32, i32
  }
  func.func @transform_9(%arg0: i32) -> (i32, i32) {
    %c0_i32 = arith.constant 0 : i32
    %c0_i32_0 = arith.constant 0 : i32
    %c0_i32_1 = arith.constant 0 : i32
    return %c0_i32, %c0_i32_0 : i32, i32
  }
  func.func @transform_10(%arg0: i32) -> (i32, i32) {
    %c0_i32 = arith.constant 0 : i32
    %c0_i32_0 = arith.constant 0 : i32
    return %arg0, %c0_i32 : i32, i32
  }
}

module attributes {stable_mosaic.version = 11 : i64} {
  func.func @attention_kernel(%arg0: i32, %arg1: memref<1x8x96xbf16, #tpu.memory_space<vmem>>, %arg2: memref<1x8x32xbf16, #tpu.memory_space<vmem>>) attributes {dimension_semantics = [#tpu.dimension_semantics<parallel>], iteration_bounds = array<i64: 2>, scalar_prefetch = 0 : i64, scratch_operands = 0 : i64, tpu.core_type = #tpu.core_type<tc>, window_params = [{transform_indices = @transform_0, window_bounds = array<i64: 1, 8, 96>}, {transform_indices = @transform_1, window_bounds = array<i64: 1, 8, 32>}]} {
    %c0 = arith.constant 0 : index
    %c0_0 = arith.constant 0 : index
    %c0_1 = arith.constant 0 : index
    %0 = vector.load %arg1[%c0, %c0_0, %c0_1] : memref<1x8x96xbf16, #tpu.memory_space<vmem>>, vector<1x8x96xbf16>
    %1 = vector.shape_cast %0 : vector<1x8x96xbf16> to vector<8x96xbf16>
    %2 = tpu.iota {dimensions = array<i32: 0>} : vector<8x8xi32>
    %3 = tpu.iota {dimensions = array<i32: 1>} : vector<8x8xi32>
    %4 = arith.cmpi sge, %2, %3 : vector<8x8xi32>
    %5 = vector.extract_strided_slice %1 {offsets = [0, 0], sizes = [8, 8], strides = [1, 1]} : vector<8x96xbf16> to vector<8x8xbf16>
    %6 = vector.extract_strided_slice %1 {offsets = [0, 32], sizes = [8, 8], strides = [1, 1]} : vector<8x96xbf16> to vector<8x8xbf16>
    %7 = vector.extract_strided_slice %1 {offsets = [0, 64], sizes = [8, 8], strides = [1, 1]} : vector<8x96xbf16> to vector<8x8xbf16>
    %cst = arith.constant dense<0.000000e+00> : vector<8x8xf32>
    %8 = tpu.matmul %5, %6, %cst {dimension_numbers = #tpu.dot_dimension_numbers<[1], [1], [0], [0], [0, 0, 1, 0], [], []>} : vector<8x8xbf16>, vector<8x8xbf16>, vector<8x8xf32> -> vector<8x8xf32>
    %cst_2 = arith.constant 0.353553385 : f32
    %9 = vector.broadcast %cst_2 : f32 to vector<8x8xf32>
    %10 = arith.mulf %8, %9 : vector<8x8xf32>
    %cst_3 = arith.constant 0xFF800000 : f32
    %11 = vector.broadcast %cst_3 : f32 to vector<8x8xf32>
    %12 = arith.select %4, %10, %11 : vector<8x8xi1>, vector<8x8xf32>
    %cst_4 = arith.constant dense<0xFF800000> : vector<8xf32>
    %13 = vector.multi_reduction <maximumf>, %12, %cst_4 [1] : vector<8x8xf32> to vector<8xf32>
    %14 = vector.shape_cast %13 : vector<8xf32> to vector<8x1xf32>
    %15 = vector.broadcast %14 : vector<8x1xf32> to vector<8x8xf32>
    %16 = arith.subf %12, %15 : vector<8x8xf32>
    %17 = math.exp %16 : vector<8x8xf32>
    %cst_5 = arith.constant dense<0.000000e+00> : vector<8xf32>
    %18 = vector.multi_reduction <add>, %17, %cst_5 [1] : vector<8x8xf32> to vector<8xf32>
    %19 = vector.shape_cast %18 : vector<8xf32> to vector<8x1xf32>
    %20 = tpu.reciprocal %19 {approx = true} : vector<8x1xf32> -> vector<8x1xf32>
    %21 = vector.broadcast %20 : vector<8x1xf32> to vector<8x8xf32>
    %22 = arith.mulf %17, %21 : vector<8x8xf32>
    %23 = arith.truncf %22 : vector<8x8xf32> to vector<8x8xbf16>
    %cst_6 = arith.constant dense<0.000000e+00> : vector<8x8xf32>
    %24 = tpu.matmul %23, %7, %cst_6 {dimension_numbers = #tpu.dot_dimension_numbers<[1], [0], [0], [1], [0, 0, 1, 1], [], []>} : vector<8x8xbf16>, vector<8x8xbf16>, vector<8x8xf32> -> vector<8x8xf32>
    %25 = vector.extract_strided_slice %1 {offsets = [0, 8], sizes = [8, 8], strides = [1, 1]} : vector<8x96xbf16> to vector<8x8xbf16>
    %26 = vector.extract_strided_slice %1 {offsets = [0, 40], sizes = [8, 8], strides = [1, 1]} : vector<8x96xbf16> to vector<8x8xbf16>
    %27 = vector.extract_strided_slice %1 {offsets = [0, 72], sizes = [8, 8], strides = [1, 1]} : vector<8x96xbf16> to vector<8x8xbf16>
    %cst_7 = arith.constant dense<0.000000e+00> : vector<8x8xf32>
    %28 = tpu.matmul %25, %26, %cst_7 {dimension_numbers = #tpu.dot_dimension_numbers<[1], [1], [0], [0], [0, 0, 1, 0], [], []>} : vector<8x8xbf16>, vector<8x8xbf16>, vector<8x8xf32> -> vector<8x8xf32>
    %cst_8 = arith.constant 0.353553385 : f32
    %29 = vector.broadcast %cst_8 : f32 to vector<8x8xf32>
    %30 = arith.mulf %28, %29 : vector<8x8xf32>
    %cst_9 = arith.constant 0xFF800000 : f32
    %31 = vector.broadcast %cst_9 : f32 to vector<8x8xf32>
    %32 = arith.select %4, %30, %31 : vector<8x8xi1>, vector<8x8xf32>
    %cst_10 = arith.constant dense<0xFF800000> : vector<8xf32>
    %33 = vector.multi_reduction <maximumf>, %32, %cst_10 [1] : vector<8x8xf32> to vector<8xf32>
    %34 = vector.shape_cast %33 : vector<8xf32> to vector<8x1xf32>
    %35 = vector.broadcast %34 : vector<8x1xf32> to vector<8x8xf32>
    %36 = arith.subf %32, %35 : vector<8x8xf32>
    %37 = math.exp %36 : vector<8x8xf32>
    %cst_11 = arith.constant dense<0.000000e+00> : vector<8xf32>
    %38 = vector.multi_reduction <add>, %37, %cst_11 [1] : vector<8x8xf32> to vector<8xf32>
    %39 = vector.shape_cast %38 : vector<8xf32> to vector<8x1xf32>
    %40 = tpu.reciprocal %39 {approx = true} : vector<8x1xf32> -> vector<8x1xf32>
    %41 = vector.broadcast %40 : vector<8x1xf32> to vector<8x8xf32>
    %42 = arith.mulf %37, %41 : vector<8x8xf32>
    %43 = arith.truncf %42 : vector<8x8xf32> to vector<8x8xbf16>
    %cst_12 = arith.constant dense<0.000000e+00> : vector<8x8xf32>
    %44 = tpu.matmul %43, %27, %cst_12 {dimension_numbers = #tpu.dot_dimension_numbers<[1], [0], [0], [1], [0, 0, 1, 1], [], []>} : vector<8x8xbf16>, vector<8x8xbf16>, vector<8x8xf32> -> vector<8x8xf32>
    %45 = vector.extract_strided_slice %1 {offsets = [0, 16], sizes = [8, 8], strides = [1, 1]} : vector<8x96xbf16> to vector<8x8xbf16>
    %46 = vector.extract_strided_slice %1 {offsets = [0, 48], sizes = [8, 8], strides = [1, 1]} : vector<8x96xbf16> to vector<8x8xbf16>
    %47 = vector.extract_strided_slice %1 {offsets = [0, 80], sizes = [8, 8], strides = [1, 1]} : vector<8x96xbf16> to vector<8x8xbf16>
    %cst_13 = arith.constant dense<0.000000e+00> : vector<8x8xf32>
    %48 = tpu.matmul %45, %46, %cst_13 {dimension_numbers = #tpu.dot_dimension_numbers<[1], [1], [0], [0], [0, 0, 1, 0], [], []>} : vector<8x8xbf16>, vector<8x8xbf16>, vector<8x8xf32> -> vector<8x8xf32>
    %cst_14 = arith.constant 0.353553385 : f32
    %49 = vector.broadcast %cst_14 : f32 to vector<8x8xf32>
    %50 = arith.mulf %48, %49 : vector<8x8xf32>
    %cst_15 = arith.constant 0xFF800000 : f32
    %51 = vector.broadcast %cst_15 : f32 to vector<8x8xf32>
    %52 = arith.select %4, %50, %51 : vector<8x8xi1>, vector<8x8xf32>
    %cst_16 = arith.constant dense<0xFF800000> : vector<8xf32>
    %53 = vector.multi_reduction <maximumf>, %52, %cst_16 [1] : vector<8x8xf32> to vector<8xf32>
    %54 = vector.shape_cast %53 : vector<8xf32> to vector<8x1xf32>
    %55 = vector.broadcast %54 : vector<8x1xf32> to vector<8x8xf32>
    %56 = arith.subf %52, %55 : vector<8x8xf32>
    %57 = math.exp %56 : vector<8x8xf32>
    %cst_17 = arith.constant dense<0.000000e+00> : vector<8xf32>
    %58 = vector.multi_reduction <add>, %57, %cst_17 [1] : vector<8x8xf32> to vector<8xf32>
    %59 = vector.shape_cast %58 : vector<8xf32> to vector<8x1xf32>
    %60 = tpu.reciprocal %59 {approx = true} : vector<8x1xf32> -> vector<8x1xf32>
    %61 = vector.broadcast %60 : vector<8x1xf32> to vector<8x8xf32>
    %62 = arith.mulf %57, %61 : vector<8x8xf32>
    %63 = arith.truncf %62 : vector<8x8xf32> to vector<8x8xbf16>
    %cst_18 = arith.constant dense<0.000000e+00> : vector<8x8xf32>
    %64 = tpu.matmul %63, %47, %cst_18 {dimension_numbers = #tpu.dot_dimension_numbers<[1], [0], [0], [1], [0, 0, 1, 1], [], []>} : vector<8x8xbf16>, vector<8x8xbf16>, vector<8x8xf32> -> vector<8x8xf32>
    %65 = vector.extract_strided_slice %1 {offsets = [0, 24], sizes = [8, 8], strides = [1, 1]} : vector<8x96xbf16> to vector<8x8xbf16>
    %66 = vector.extract_strided_slice %1 {offsets = [0, 56], sizes = [8, 8], strides = [1, 1]} : vector<8x96xbf16> to vector<8x8xbf16>
    %67 = vector.extract_strided_slice %1 {offsets = [0, 88], sizes = [8, 8], strides = [1, 1]} : vector<8x96xbf16> to vector<8x8xbf16>
    %cst_19 = arith.constant dense<0.000000e+00> : vector<8x8xf32>
    %68 = tpu.matmul %65, %66, %cst_19 {dimension_numbers = #tpu.dot_dimension_numbers<[1], [1], [0], [0], [0, 0, 1, 0], [], []>} : vector<8x8xbf16>, vector<8x8xbf16>, vector<8x8xf32> -> vector<8x8xf32>
    %cst_20 = arith.constant 0.353553385 : f32
    %69 = vector.broadcast %cst_20 : f32 to vector<8x8xf32>
    %70 = arith.mulf %68, %69 : vector<8x8xf32>
    %cst_21 = arith.constant 0xFF800000 : f32
    %71 = vector.broadcast %cst_21 : f32 to vector<8x8xf32>
    %72 = arith.select %4, %70, %71 : vector<8x8xi1>, vector<8x8xf32>
    %cst_22 = arith.constant dense<0xFF800000> : vector<8xf32>
    %73 = vector.multi_reduction <maximumf>, %72, %cst_22 [1] : vector<8x8xf32> to vector<8xf32>
    %74 = vector.shape_cast %73 : vector<8xf32> to vector<8x1xf32>
    %75 = vector.broadcast %74 : vector<8x1xf32> to vector<8x8xf32>
    %76 = arith.subf %72, %75 : vector<8x8xf32>
    %77 = math.exp %76 : vector<8x8xf32>
    %cst_23 = arith.constant dense<0.000000e+00> : vector<8xf32>
    %78 = vector.multi_reduction <add>, %77, %cst_23 [1] : vector<8x8xf32> to vector<8xf32>
    %79 = vector.shape_cast %78 : vector<8xf32> to vector<8x1xf32>
    %80 = tpu.reciprocal %79 {approx = true} : vector<8x1xf32> -> vector<8x1xf32>
    %81 = vector.broadcast %80 : vector<8x1xf32> to vector<8x8xf32>
    %82 = arith.mulf %77, %81 : vector<8x8xf32>
    %83 = arith.truncf %82 : vector<8x8xf32> to vector<8x8xbf16>
    %cst_24 = arith.constant dense<0.000000e+00> : vector<8x8xf32>
    %84 = tpu.matmul %83, %67, %cst_24 {dimension_numbers = #tpu.dot_dimension_numbers<[1], [0], [0], [1], [0, 0, 1, 1], [], []>} : vector<8x8xbf16>, vector<8x8xbf16>, vector<8x8xf32> -> vector<8x8xf32>
    %85 = tpu.concatenate %24, %44, %64, %84 in 1 : vector<8x8xf32>, vector<8x8xf32>, vector<8x8xf32>, vector<8x8xf32> -> vector<8x32xf32>
    %86 = arith.truncf %85 : vector<8x32xf32> to vector<8x32xbf16>
    %c0_25 = arith.constant 0 : index
    %c0_26 = arith.constant 0 : index
    %c0_27 = arith.constant 0 : index
    %87 = vector.load %arg2[%c0_25, %c0_26, %c0_27] : memref<1x8x32xbf16, #tpu.memory_space<vmem>>, vector<1x8x32xbf16>
    %88 = vector.shape_cast %87 : vector<1x8x32xbf16> to vector<8x32xbf16>
    %89 = vector.shape_cast %86 : vector<8x32xbf16> to vector<1x8x32xbf16>
    tpu.vector_store %arg2[%c0_25, %c0_26, %c0_27], %89 {strides = array<i32>} : memref<1x8x32xbf16, #tpu.memory_space<vmem>>, vector<1x8x32xbf16>,
    return
  }
  func.func @transform_0(%arg0: i32) -> (i32, i32, i32) {
    %c0_i32 = arith.constant 0 : i32
    %c0_i32_0 = arith.constant 0 : i32
    %c0_i32_1 = arith.constant 0 : i32
    return %arg0, %c0_i32, %c0_i32_0 : i32, i32, i32
  }
  func.func @transform_1(%arg0: i32) -> (i32, i32, i32) {
    %c0_i32 = arith.constant 0 : i32
    %c0_i32_0 = arith.constant 0 : i32
    %c0_i32_1 = arith.constant 0 : i32
    return %arg0, %c0_i32, %c0_i32_0 : i32, i32, i32
  }
}

module attributes {stable_mosaic.version = 11 : i64} {
  func.func @proj_ffn_kernel(%arg0: i32, %arg1: memref<16x32xbf16, #tpu.memory_space<vmem>>, %arg2: memref<16x32xbf16, #tpu.memory_space<vmem>>, %arg3: memref<32x32xbf16, #tpu.memory_space<vmem>>, %arg4: memref<1x32xf32, #tpu.memory_space<vmem>>, %arg5: memref<1x32xf32, #tpu.memory_space<vmem>>, %arg6: memref<1x32xf32, #tpu.memory_space<vmem>>, %arg7: memref<32x128xbf16, #tpu.memory_space<vmem>>, %arg8: memref<1x128xf32, #tpu.memory_space<vmem>>, %arg9: memref<128x32xbf16, #tpu.memory_space<vmem>>, %arg10: memref<1x32xf32, #tpu.memory_space<vmem>>, %arg11: memref<1x32xf32, #tpu.memory_space<vmem>>, %arg12: memref<1x32xf32, #tpu.memory_space<vmem>>, %arg13: memref<16x32xbf16, #tpu.memory_space<vmem>>) attributes {dimension_semantics = [#tpu.dimension_semantics<parallel>], iteration_bounds = array<i64: 1>, scalar_prefetch = 0 : i64, scratch_operands = 0 : i64, tpu.core_type = #tpu.core_type<tc>, window_params = [{transform_indices = @transform_0, window_bounds = array<i64: 16, 32>}, {transform_indices = @transform_1, window_bounds = array<i64: 16, 32>}, {pipeline_mode = #tpu.pipeline_mode<synchronous>, transform_indices = @transform_2, window_bounds = array<i64: 32, 32>}, {pipeline_mode = #tpu.pipeline_mode<synchronous>, transform_indices = @transform_3, window_bounds = array<i64: 1, 32>}, {pipeline_mode = #tpu.pipeline_mode<synchronous>, transform_indices = @transform_4, window_bounds = array<i64: 1, 32>}, {pipeline_mode = #tpu.pipeline_mode<synchronous>, transform_indices = @transform_5, window_bounds = array<i64: 1, 32>}, {pipeline_mode = #tpu.pipeline_mode<synchronous>, transform_indices = @transform_6, window_bounds = array<i64: 32, 128>}, {pipeline_mode = #tpu.pipeline_mode<synchronous>, transform_indices = @transform_7, window_bounds = array<i64: 1, 128>}, {pipeline_mode = #tpu.pipeline_mode<synchronous>, transform_indices = @transform_8, window_bounds = array<i64: 128, 32>}, {pipeline_mode = #tpu.pipeline_mode<synchronous>, transform_indices = @transform_9, window_bounds = array<i64: 1, 32>}, {pipeline_mode = #tpu.pipeline_mode<synchronous>, transform_indices = @transform_10, window_bounds = array<i64: 1, 32>}, {pipeline_mode = #tpu.pipeline_mode<synchronous>, transform_indices = @transform_11, window_bounds = array<i64: 1, 32>}, {transform_indices = @transform_12, window_bounds = array<i64: 16, 32>}]} {
    %c0 = arith.constant 0 : index
    %c0_0 = arith.constant 0 : index
    %0 = vector.load %arg1[%c0, %c0_0] : memref<16x32xbf16, #tpu.memory_space<vmem>>, vector<16x32xbf16>
    %c0_1 = arith.constant 0 : index
    %c0_2 = arith.constant 0 : index
    %1 = vector.load %arg2[%c0_1, %c0_2] : memref<16x32xbf16, #tpu.memory_space<vmem>>, vector<16x32xbf16>
    %2 = arith.extf %1 : vector<16x32xbf16> to vector<16x32xf32>
    %c0_3 = arith.constant 0 : index
    %c0_4 = arith.constant 0 : index
    %3 = vector.load %arg3[%c0_3, %c0_4] : memref<32x32xbf16, #tpu.memory_space<vmem>>, vector<32x32xbf16>
    %cst = arith.constant dense<0.000000e+00> : vector<16x32xf32>
    %4 = tpu.matmul %0, %3, %cst {dimension_numbers = #tpu.dot_dimension_numbers<[1], [0], [0], [1], [0, 0, 1, 1], [], []>} : vector<16x32xbf16>, vector<32x32xbf16>, vector<16x32xf32> -> vector<16x32xf32>
    %c0_5 = arith.constant 0 : index
    %c0_6 = arith.constant 0 : index
    %5 = vector.load %arg4[%c0_5, %c0_6] : memref<1x32xf32, #tpu.memory_space<vmem>>, vector<1x32xf32>
    %6 = vector.broadcast %5 : vector<1x32xf32> to vector<16x32xf32>
    %7 = arith.addf %4, %6 : vector<16x32xf32>
    %8 = arith.addf %2, %7 : vector<16x32xf32>
    %c0_7 = arith.constant 0 : index
    %c0_8 = arith.constant 0 : index
    %9 = vector.load %arg5[%c0_7, %c0_8] : memref<1x32xf32, #tpu.memory_space<vmem>>, vector<1x32xf32>
    %c0_9 = arith.constant 0 : index
    %c0_10 = arith.constant 0 : index
    %10 = vector.load %arg6[%c0_9, %c0_10] : memref<1x32xf32, #tpu.memory_space<vmem>>, vector<1x32xf32>
    %cst_11 = arith.constant dense<0.000000e+00> : vector<16xf32>
    %11 = vector.multi_reduction <add>, %8, %cst_11 [1] : vector<16x32xf32> to vector<16xf32>
    %12 = vector.shape_cast %11 : vector<16xf32> to vector<16x1xf32>
    %cst_12 = arith.constant 3.200000e+01 : f32
    %13 = vector.broadcast %cst_12 : f32 to vector<16x1xf32>
    %14 = arith.divf %12, %13 : vector<16x1xf32>
    %15 = vector.broadcast %14 : vector<16x1xf32> to vector<16x32xf32>
    %16 = arith.subf %8, %15 : vector<16x32xf32>
    %17 = arith.mulf %16, %16 : vector<16x32xf32>
    %cst_13 = arith.constant dense<0.000000e+00> : vector<16xf32>
    %18 = vector.multi_reduction <add>, %17, %cst_13 [1] : vector<16x32xf32> to vector<16xf32>
    %19 = vector.shape_cast %18 : vector<16xf32> to vector<16x1xf32>
    %cst_14 = arith.constant 3.200000e+01 : f32
    %20 = vector.broadcast %cst_14 : f32 to vector<16x1xf32>
    %21 = arith.divf %19, %20 : vector<16x1xf32>
    %22 = vector.broadcast %14 : vector<16x1xf32> to vector<16x32xf32>
    %23 = arith.subf %8, %22 : vector<16x32xf32>
    %cst_15 = arith.constant 9.99999974E-6 : f32
    %24 = vector.broadcast %cst_15 : f32 to vector<16x1xf32>
    %25 = arith.addf %21, %24 : vector<16x1xf32>
    %26 = math.rsqrt %25 : vector<16x1xf32>
    %27 = vector.broadcast %26 : vector<16x1xf32> to vector<16x32xf32>
    %28 = arith.mulf %23, %27 : vector<16x32xf32>
    %29 = vector.broadcast %9 : vector<1x32xf32> to vector<16x32xf32>
    %30 = arith.mulf %28, %29 : vector<16x32xf32>
    %31 = vector.broadcast %10 : vector<1x32xf32> to vector<16x32xf32>
    %32 = arith.addf %30, %31 : vector<16x32xf32>
    %33 = arith.truncf %32 : vector<16x32xf32> to vector<16x32xbf16>
    %c0_16 = arith.constant 0 : index
    %c0_17 = arith.constant 0 : index
    %34 = vector.load %arg7[%c0_16, %c0_17] : memref<32x128xbf16, #tpu.memory_space<vmem>>, vector<32x128xbf16>
    %cst_18 = arith.constant dense<0.000000e+00> : vector<16x128xf32>
    %35 = tpu.matmul %33, %34, %cst_18 {dimension_numbers = #tpu.dot_dimension_numbers<[1], [0], [0], [1], [0, 0, 1, 1], [], []>} : vector<16x32xbf16>, vector<32x128xbf16>, vector<16x128xf32> -> vector<16x128xf32>
    %c0_19 = arith.constant 0 : index
    %c0_20 = arith.constant 0 : index
    %36 = vector.load %arg8[%c0_19, %c0_20] : memref<1x128xf32, #tpu.memory_space<vmem>>, vector<1x128xf32>
    %37 = vector.broadcast %36 : vector<1x128xf32> to vector<16x128xf32>
    %38 = arith.addf %35, %37 : vector<16x128xf32>
    %cst_21 = arith.constant 0.000000e+00 : f32
    %39 = vector.broadcast %cst_21 : f32 to vector<16x128xf32>
    %40 = arith.maximumf %38, %39 : vector<16x128xf32>
    %41 = arith.truncf %40 : vector<16x128xf32> to vector<16x128xbf16>
    %c0_22 = arith.constant 0 : index
    %c0_23 = arith.constant 0 : index
    %42 = vector.load %arg9[%c0_22, %c0_23] : memref<128x32xbf16, #tpu.memory_space<vmem>>, vector<128x32xbf16>
    %cst_24 = arith.constant dense<0.000000e+00> : vector<16x32xf32>
    %43 = tpu.matmul %41, %42, %cst_24 {dimension_numbers = #tpu.dot_dimension_numbers<[1], [0], [0], [1], [0, 0, 1, 1], [], []>} : vector<16x128xbf16>, vector<128x32xbf16>, vector<16x32xf32> -> vector<16x32xf32>
    %c0_25 = arith.constant 0 : index
    %c0_26 = arith.constant 0 : index
    %44 = vector.load %arg10[%c0_25, %c0_26] : memref<1x32xf32, #tpu.memory_space<vmem>>, vector<1x32xf32>
    %45 = vector.broadcast %44 : vector<1x32xf32> to vector<16x32xf32>
    %46 = arith.addf %43, %45 : vector<16x32xf32>
    %47 = arith.addf %8, %46 : vector<16x32xf32>
    %c0_27 = arith.constant 0 : index
    %c0_28 = arith.constant 0 : index
    %48 = vector.load %arg11[%c0_27, %c0_28] : memref<1x32xf32, #tpu.memory_space<vmem>>, vector<1x32xf32>
    %c0_29 = arith.constant 0 : index
    %c0_30 = arith.constant 0 : index
    %49 = vector.load %arg12[%c0_29, %c0_30] : memref<1x32xf32, #tpu.memory_space<vmem>>, vector<1x32xf32>
    %cst_31 = arith.constant dense<0.000000e+00> : vector<16xf32>
    %50 = vector.multi_reduction <add>, %47, %cst_31 [1] : vector<16x32xf32> to vector<16xf32>
    %51 = vector.shape_cast %50 : vector<16xf32> to vector<16x1xf32>
    %cst_32 = arith.constant 3.200000e+01 : f32
    %52 = vector.broadcast %cst_32 : f32 to vector<16x1xf32>
    %53 = arith.divf %51, %52 : vector<16x1xf32>
    %54 = vector.broadcast %53 : vector<16x1xf32> to vector<16x32xf32>
    %55 = arith.subf %47, %54 : vector<16x32xf32>
    %56 = arith.mulf %55, %55 : vector<16x32xf32>
    %cst_33 = arith.constant dense<0.000000e+00> : vector<16xf32>
    %57 = vector.multi_reduction <add>, %56, %cst_33 [1] : vector<16x32xf32> to vector<16xf32>
    %58 = vector.shape_cast %57 : vector<16xf32> to vector<16x1xf32>
    %cst_34 = arith.constant 3.200000e+01 : f32
    %59 = vector.broadcast %cst_34 : f32 to vector<16x1xf32>
    %60 = arith.divf %58, %59 : vector<16x1xf32>
    %61 = vector.broadcast %53 : vector<16x1xf32> to vector<16x32xf32>
    %62 = arith.subf %47, %61 : vector<16x32xf32>
    %cst_35 = arith.constant 9.99999974E-6 : f32
    %63 = vector.broadcast %cst_35 : f32 to vector<16x1xf32>
    %64 = arith.addf %60, %63 : vector<16x1xf32>
    %65 = math.rsqrt %64 : vector<16x1xf32>
    %66 = vector.broadcast %65 : vector<16x1xf32> to vector<16x32xf32>
    %67 = arith.mulf %62, %66 : vector<16x32xf32>
    %68 = vector.broadcast %48 : vector<1x32xf32> to vector<16x32xf32>
    %69 = arith.mulf %67, %68 : vector<16x32xf32>
    %70 = vector.broadcast %49 : vector<1x32xf32> to vector<16x32xf32>
    %71 = arith.addf %69, %70 : vector<16x32xf32>
    %72 = arith.truncf %71 : vector<16x32xf32> to vector<16x32xbf16>
    %c0_36 = arith.constant 0 : index
    %c0_37 = arith.constant 0 : index
    %73 = vector.load %arg13[%c0_36, %c0_37] : memref<16x32xbf16, #tpu.memory_space<vmem>>, vector<16x32xbf16>
    tpu.vector_store %arg13[%c0_36, %c0_37], %72 {strides = array<i32>} : memref<16x32xbf16, #tpu.memory_space<vmem>>, vector<16x32xbf16>,
    return
  }
  func.func @transform_0(%arg0: i32) -> (i32, i32) {
    %c0_i32 = arith.constant 0 : i32
    %c0_i32_0 = arith.constant 0 : i32
    return %arg0, %c0_i32 : i32, i32
  }
  func.func @transform_1(%arg0: i32) -> (i32, i32) {
    %c0_i32 = arith.constant 0 : i32
    %c0_i32_0 = arith.constant 0 : i32
    return %arg0, %c0_i32 : i32, i32
  }
  func.func @transform_2(%arg0: i32) -> (i32, i32) {
    %c0_i32 = arith.constant 0 : i32
    %c0_i32_0 = arith.constant 0 : i32
    %c0_i32_1 = arith.constant 0 : i32
    return %c0_i32, %c0_i32_0 : i32, i32
  }
  func.func @transform_3(%arg0: i32) -> (i32, i32) {
    %c0_i32 = arith.constant 0 : i32
    %c0_i32_0 = arith.constant 0 : i32
    %c0_i32_1 = arith.constant 0 : i32
    return %c0_i32, %c0_i32_0 : i32, i32
  }
  func.func @transform_4(%arg0: i32) -> (i32, i32) {
    %c0_i32 = arith.constant 0 : i32
    %c0_i32_0 = arith.constant 0 : i32
    %c0_i32_1 = arith.constant 0 : i32
    return %c0_i32, %c0_i32_0 : i32, i32
  }
  func.func @transform_5(%arg0: i32) -> (i32, i32) {
    %c0_i32 = arith.constant 0 : i32
    %c0_i32_0 = arith.constant 0 : i32
    %c0_i32_1 = arith.constant 0 : i32
    return %c0_i32, %c0_i32_0 : i32, i32
  }
  func.func @transform_6(%arg0: i32) -> (i32, i32) {
    %c0_i32 = arith.constant 0 : i32
    %c0_i32_0 = arith.constant 0 : i32
    %c0_i32_1 = arith.constant 0 : i32
    return %c0_i32, %c0_i32_0 : i32, i32
  }
  func.func @transform_7(%arg0: i32) -> (i32, i32) {
    %c0_i32 = arith.constant 0 : i32
    %c0_i32_0 = arith.constant 0 : i32
    %c0_i32_1 = arith.constant 0 : i32
    return %c0_i32, %c0_i32_0 : i32, i32
  }
  func.func @transform_8(%arg0: i32) -> (i32, i32) {
    %c0_i32 = arith.constant 0 : i32
    %c0_i32_0 = arith.constant 0 : i32
    %c0_i32_1 = arith.constant 0 : i32
    return %c0_i32, %c0_i32_0 : i32, i32
  }
  func.func @transform_9(%arg0: i32) -> (i32, i32) {
    %c0_i32 = arith.constant 0 : i32
    %c0_i32_0 = arith.constant 0 : i32
    %c0_i32_1 = arith.constant 0 : i32
    return %c0_i32, %c0_i32_0 : i32, i32
  }
  func.func @transform_10(%arg0: i32) -> (i32, i32) {
    %c0_i32 = arith.constant 0 : i32
    %c0_i32_0 = arith.constant 0 : i32
    %c0_i32_1 = arith.constant 0 : i32
    return %c0_i32, %c0_i32_0 : i32, i32
  }
  func.func @transform_11(%arg0: i32) -> (i32, i32) {
    %c0_i32 = arith.constant 0 : i32
    %c0_i32_0 = arith.constant 0 : i32
    %c0_i32_1 = arith.constant 0 : i32
    return %c0_i32, %c0_i32_0 : i32, i32
  }
  func.func @transform_12(%arg0: i32) -> (i32, i32) {
    %c0_i32 = arith.constant 0 : i32
    %c0_i32_0 = arith.constant 0 : i32
    return %arg0, %c0_i32 : i32, i32
  }
}

module attributes {stable_mosaic.version = 11 : i64} {
  func.func @lm_head_kernel(%arg0: i32, %arg1: i32, %arg2: memref<16x32xbf16, #tpu.memory_space<vmem>>, %arg3: memref<32x128xbf16, #tpu.memory_space<vmem>>, %arg4: memref<1x128xf32, #tpu.memory_space<vmem>>, %arg5: memref<16x128xf32, #tpu.memory_space<vmem>>) attributes {dimension_semantics = [#tpu.dimension_semantics<parallel>, #tpu.dimension_semantics<parallel>], iteration_bounds = array<i64: 1, 1>, scalar_prefetch = 0 : i64, scratch_operands = 0 : i64, tpu.core_type = #tpu.core_type<tc>, window_params = [{transform_indices = @transform_0, window_bounds = array<i64: 16, 32>}, {transform_indices = @transform_1, window_bounds = array<i64: 32, 128>}, {transform_indices = @transform_2, window_bounds = array<i64: 1, 128>}, {transform_indices = @transform_3, window_bounds = array<i64: 16, 128>}]} {
    %c0 = arith.constant 0 : index
    %c0_0 = arith.constant 0 : index
    %0 = vector.load %arg2[%c0, %c0_0] : memref<16x32xbf16, #tpu.memory_space<vmem>>, vector<16x32xbf16>
    %c0_1 = arith.constant 0 : index
    %c0_2 = arith.constant 0 : index
    %1 = vector.load %arg3[%c0_1, %c0_2] : memref<32x128xbf16, #tpu.memory_space<vmem>>, vector<32x128xbf16>
    %cst = arith.constant dense<0.000000e+00> : vector<16x128xf32>
    %2 = tpu.matmul %0, %1, %cst {dimension_numbers = #tpu.dot_dimension_numbers<[1], [0], [0], [1], [0, 0, 1, 1], [], []>} : vector<16x32xbf16>, vector<32x128xbf16>, vector<16x128xf32> -> vector<16x128xf32>
    %c0_3 = arith.constant 0 : index
    %c0_4 = arith.constant 0 : index
    %3 = vector.load %arg4[%c0_3, %c0_4] : memref<1x128xf32, #tpu.memory_space<vmem>>, vector<1x128xf32>
    %4 = vector.broadcast %3 : vector<1x128xf32> to vector<16x128xf32>
    %5 = arith.addf %2, %4 : vector<16x128xf32>
    %c0_5 = arith.constant 0 : index
    %c0_6 = arith.constant 0 : index
    %6 = vector.load %arg5[%c0_5, %c0_6] : memref<16x128xf32, #tpu.memory_space<vmem>>, vector<16x128xf32>
    tpu.vector_store %arg5[%c0_5, %c0_6], %5 {strides = array<i32>} : memref<16x128xf32, #tpu.memory_space<vmem>>, vector<16x128xf32>,
    return
  }
  func.func @transform_0(%arg0: i32, %arg1: i32) -> (i32, i32) {
    %c0_i32 = arith.constant 0 : i32
    %c0_i32_0 = arith.constant 0 : i32
    return %arg1, %c0_i32 : i32, i32
  }
  func.func @transform_1(%arg0: i32, %arg1: i32) -> (i32, i32) {
    %c0_i32 = arith.constant 0 : i32
    %c0_i32_0 = arith.constant 0 : i32
    return %c0_i32, %arg0 : i32, i32
  }
  func.func @transform_2(%arg0: i32, %arg1: i32) -> (i32, i32) {
    %c0_i32 = arith.constant 0 : i32
    %c0_i32_0 = arith.constant 0 : i32
    return %c0_i32, %arg0 : i32, i32
  }
  func.func @transform_3(%arg0: i32, %arg1: i32) -> (i32, i32) {
    %c0_i32 = arith.constant 0 : i32
    return %arg1, %arg0 : i32, i32
  }
}

</mosaic_0001>

<bundles_post_ra>
// kernel: transformer_forward.7
= control target key start
LH: loop header
LB: loop body
LE: loop exit
PB: predicated region body
PF: predicated region fallthrough
CT: control target
= control target key end

     0   :  { %vm24_vm0 = vcmask 261120   ;;  %v176_v15 = vmov 0.0   ;;  %vm177_vm1 = vmmov 0   ;;  %vm137_vm2 = vcmask 781312   ;;  %s229_s0 = inlined_call_operand.vmem [shape: bf16[16,32], index: 0, kind: input, shape index: {}]   ;;  %s230_s3 = inlined_call_operand.vmem [shape: bf16[32,96], index: 3, kind: input, shape index: {}]   ;;  %s231_s1 = inlined_call_operand.vmem [shape: f32[1,32], index: 1, kind: input, shape index: {}]   ;;  %s232_s2 = inlined_call_operand.vmem [shape: f32[1,32], index: 2, kind: input, shape index: {}]   ;;  %s233_s4 = inlined_call_operand.vmem [shape: bf16[16,96], index: 4, kind: output, shape index: {}]  }
   0x1   :  { %v154_v0 = vld [vmem:[%s229_s0] sm:$0xff]   ;;  %160 = vmatprep.subr.bf16.mxu0 %v176_v15  ;;  %v170_v16 = vld [vmem:[%s230_s3 + $0x8] sm:$0xff]   ;;  %164 = vmatprep.mubr.msk.bf16.mxu0 %vm177_vm1, %v176_v15 }
   0x2   :  { %v155_v1 = vunpack.c.l.bf16 %v154_v0  ;;  %v156_v2 = vunpack.c.h.bf16 %v154_v0  ;;  %161 = vmatpush3.bf16.msra.mxu0 %v170_v16  ;;  %v171_v17 = vld [vmem:[%s230_s3] sm:$0xff]  }
   0x3   :  { %162 = vmatprep.subr.bf16.mxu0 %v176_v15  ;;  %v144_v26 = vld [vmem:[%s231_s1] ss:$0 sm:$0xff] }
   0x4   :  { %v25_v3 = vsel %vm24_vm0, %v155_v1, 0.0  ;;  %v28_v4 = vsel %vm24_vm0, %v156_v2, 0.0  ;;  %v145_v30 = vld [vmem:[%s232_s2] ss:$0 sm:$0xff] }
   0x5   :  { %26 = vadd.xlane.f32.xlu0 %v25_v3 }
   0x6   :  { %163 = vmatpush3.bf16.msra.mxu0 %v171_v17 }
   0x9   :  { %29 = vadd.xlane.f32.xlu0 %v28_v4 }
  0x8e   :  { %v27_v5 = vpop.xlane.xlu0 %26 }
  0x8f   :  { %v32_v6 = vmul.f32 0.03125, %v27_v5 }
  0x91   :  { %v34_v7 = vsub.f32 %v155_v1, %v32_v6 }
  0x92   :  { %v30_v8 = vpop.xlane.xlu0 %29 }
  0x93   :  { %v33_v9 = vmul.f32 0.03125, %v30_v8  ;;  %v36_v10 = vmul.f32 %v34_v7, %v34_v7 }
  0x95   :  { %v35_v11 = vsub.f32 %v156_v2, %v33_v9  ;;  %v38_v12 = vsel %vm24_vm0, %v36_v10, 0.0 }
  0x96   :  { %39 = vadd.xlane.f32.xlu1 %v38_v12 }
  0x97   :  { %v37_v13 = vmul.f32 %v35_v11, %v35_v11 }
  0x99   :  { %v41_v14 = vsel %vm24_vm0, %v37_v13, 0.0 }
  0x9a   :  { %42 = vadd.xlane.f32.xlu1 %v41_v14 }
 0x11f   :  { %v40_v18 = vpop.xlane.xlu1 %39 }
 0x120   :  { %v44_v19 = vmul.f32 0.03125, %v40_v18 }
 0x122   :  { %v46_v20 = vadd.f32 1e-05, %v44_v19 }
 0x123   :  { %v43_v21 = vpop.xlane.xlu1 %42 }
 0x124   :  { %172 = vrsqrt.f32 %v46_v20  ;;  %v45_v22 = vmul.f32 0.03125, %v43_v21 }
 0x126   :  { %v47_v23 = vadd.f32 1e-05, %v45_v22 }
 0x128   :  { %174 = vrsqrt.f32 %v47_v23 }
 0x131   :  { %v173_v24 = vpop.eup %172 }
 0x132   :  { %v50_v25 = vmul.f32 %v173_v24, %v34_v7 }
 0x134   :  { %v58_v29 = vmul.f32 %v144_v26, %v50_v25 }
 0x135   :  { %v175_v27 = vpop.eup %174 }
 0x136   :  { %v51_v28 = vmul.f32 %v175_v27, %v35_v11  ;;  %v66_v32 = vadd.f32 %v145_v30, %v58_v29 }
 0x138   :  { %v59_v31 = vmul.f32 %v144_v26, %v51_v28 }
 0x13a   :  { %v67_v33 = vadd.f32 %v145_v30, %v59_v31 }
 0x13c   :  { %v68_v34 = vpack.c.bf16 %v67_v33, %v66_v32 }
 0x13e   :  { %165 = vmatmul.mubr.msk.bf16.vlgmr.msra.gmra.mxu0 %vm24_vm0, %v68_v34 }
 0x1fe   :  { %v122_v35 = vpop.f32.mrf.mxu0 }
 0x1ff   :  { %v151_v36 = vpack.c.bf16 %v122_v35, %v122_v35 }
 0x200   :  { %v166_v37 = vpop.f32.mrf.mxu0 }
 0x201   :  { %138 = vst.msk [vmem:[%s233_s4] sm:$0xf] %vm137_vm2, %v151_v36 }
 0x202   :  { %v125_v38 = vpop.f32.mrf.mxu0 }
 0x203   :  { %v152_v39 = vpack.c.bf16 %v125_v38, %v125_v38 }
 0x204   :  { %v167_v40 = vpop.f32.mrf.mxu0 }
 0x205   :  { %139 = vst.msk [vmem:[%s233_s4 + $0x4] sm:$0xf] %vm137_vm2, %v152_v39 }

// kernel: transformer_forward.9
= control target key start
LH: loop header
LB: loop body
LE: loop exit
PB: predicated region body
PF: predicated region fallthrough
CT: control target
= control target key end

     0   :  { %v460_v0 = vmov 0.0   ;;  %vm461_vm0 = vmmov 0   ;;  %vm70_vm1 = vcmask 261120   ;;  %vm355_vm2 = vcmask 257024   ;;  %s611_s2 = inlined_call_operand.vmem [shape: bf16[32,32], index: 2, kind: input, shape index: {}]   ;;  %s612_s0 = inlined_call_operand.vmem [shape: bf16[16,32], index: 0, kind: input, shape index: {}]   ;;  %s613_s1 = inlined_call_operand.vmem [shape: bf16[16,32], index: 1, kind: input, shape index: {}]   ;;  %s614_s3 = inlined_call_operand.vmem [shape: f32[1,32], index: 3, kind: input, shape index: {}]   ;;  %s615_s6 = inlined_call_operand.vmem [shape: bf16[32,128], index: 6, kind: input, shape index: {}]   ;;  %s616_s8 = inlined_call_operand.vmem [shape: bf16[128,32], index: 8, kind: input, shape index: {}]   ;;  %s617_s4 = inlined_call_operand.vmem [shape: f32[1,32], index: 4, kind: input, shape index: {}]   ;;  %s618_s5 = inlined_call_operand.vmem [shape: f32[1,32], index: 5, kind: input, shape index: {}]   ;;  %s619_s7 = inlined_call_operand.vmem [shape: f32[1,128], index: 7, kind: input, shape index: {}]   ;;  %s620_s9 = inlined_call_operand.vmem [shape: f32[1,32], index: 9, kind: input, shape index: {}]   ;;  %s621_s10 = inlined_call_operand.vmem [shape: bf16[16,32], index: 10, kind: output, shape index: {}]  }
   0x1   :  { %405 = vmatprep.subr.bf16.mxu1 %v460_v0  ;;  %v443_v1 = vld [vmem:[%s611_s2 + $0x8] sm:$0xff]   ;;  %409 = vmatprep.mubr.msk.bf16.mxu1 %vm461_vm0, %v460_v0  ;;  %v444_v2 = vld [vmem:[%s611_s2] sm:$0xff]   ;;  %v448_v30 = vld [vmem:[%s616_s8 + $0x38] sm:$0xff]  }
   0x2   :  { %421 = vmatprep.subr.bf16.mxu0 %v460_v0  ;;  %437 = vmatprep.mubr.msk.bf16.mxu0 %vm461_vm0, %v460_v0  ;;  %v445_v3 = vld [vmem:[%s612_s0] sm:$0xff]   ;;  %v446_v28 = vld [vmem:[%s615_s6 + $0x8] sm:$0xff]   ;;  %v449_v31 = vld [vmem:[%s616_s8 + $0x30] sm:$0xff]  }
   0x3   :  { %406 = vmatpush3.bf16.msra.mxu1 %v443_v1  ;;  %v387_v4 = vld [vmem:[%s613_s1] sm:$0xff]   ;;  %422 = vmatpush3.bf16.msra.mxu0 %v448_v30  ;;  %v450_v32 = vld [vmem:[%s616_s8 + $0x28] sm:$0xff]   ;;  %v452_v34 = vld [vmem:[%s616_s8 + $0x18] sm:$0xff]  }
   0x4   :  { %407 = vmatprep.subr.bf16.mxu1 %v460_v0  ;;  %v362_v5 = vld [vmem:[%s614_s3] ss:$0 sm:$0xff]  ;;  %v388_v6 = vunpack.c.l.bf16 %v387_v4  ;;  %v389_v11 = vunpack.c.h.bf16 %v387_v4  ;;  %423 = vmatprep.subr.bf16.mxu0 %v460_v0  ;;  %v453_v52 = vld [vmem:[%s616_s8 + $0x10] sm:$0xff]   ;;  %v454_v53 = vld [vmem:[%s616_s8 + $0x8] sm:$0xff]  }
   0x5   :  { %v447_v29 = vld [vmem:[%s615_s6] sm:$0xff]  }
   0x6   :  { %v451_v33 = vld [vmem:[%s616_s8 + $0x20] sm:$0xff]  }
   0x7   :  { %408 = vmatpush3.bf16.msra.mxu1 %v444_v2  ;;  %424 = vmatpush3.bf16.msra.mxu0 %v449_v31  ;;  %v367_v43 = vld [vmem:[%s617_s4] ss:$0 sm:$0xff] }
   0x8   :  { %413 = vmatprep.subr.bf16.mxu1 %v460_v0  ;;  %425 = vmatprep.subr.bf16.mxu0 %v460_v0  ;;  %v368_v47 = vld [vmem:[%s618_s5] ss:$0 sm:$0xff] }
   0x9   :  { %v455_v54 = vld [vmem:[%s616_s8] sm:$0xff]  }
   0xa   :  { %410 = vmatmul.mubr.msk.bf16.vlgmr.msra.gmra.mxu1 %vm70_vm1, %v445_v3  ;;  %v369_v55 = vld [vmem:[%s619_s7] ss:$0 sm:$0xff] }
   0xb   :  { %417 = vmatprep.mubr.msk.bf16.mxu1 %vm461_vm0, %v460_v0  ;;  %414 = vmatpush3.bf16.msra.mxu1 %v446_v28 }
   0xc   :  { %415 = vmatprep.subr.bf16.mxu1 %v460_v0  ;;  %426 = vmatpush3.bf16.msra.mxu0 %v450_v32 }
   0xd   :  { %427 = vmatprep.subr.bf16.mxu0 %v460_v0 }
   0xf   :  { %416 = vmatpush3.bf16.msra.mxu1 %v447_v29 }
  0x10   :  { %428 = vmatpush3.bf16.msra.mxu0 %v451_v33 }
  0x11   :  { %429 = vmatprep.subr.bf16.mxu0 %v460_v0 }
  0x14   :  { %430 = vmatpush3.bf16.msra.mxu0 %v452_v34 }
  0x15   :  { %431 = vmatprep.subr.bf16.mxu0 %v460_v0 }
  0x18   :  { %432 = vmatpush3.bf16.msra.mxu0 %v453_v52 }
  0x19   :  { %433 = vmatprep.subr.bf16.mxu0 %v460_v0 }
  0x1c   :  { %434 = vmatpush3.bf16.msra.mxu0 %v454_v53 }
  0x1d   :  { %435 = vmatprep.subr.bf16.mxu0 %v460_v0  ;;  %v373_v0 = vld [vmem:[%s620_s9] ss:$0 sm:$0xff] }
  0x20   :  { %436 = vmatpush3.bf16.msra.mxu0 %v455_v54 }
  0xca   :  { %v108_v7 = vpop.f32.mrf.mxu1 }
  0xcb   :  { %v109_v8 = vadd.f32 %v362_v5, %v108_v7 }
  0xcc   :  { %v411_v9 = vpop.f32.mrf.mxu1 }
  0xcd   :  { %v540_v10 = vadd.f32 %v388_v6, %v109_v8 }
  0xce   :  { %v111_v12 = vpop.f32.mrf.mxu1 }
  0xcf   :  { %v112_v13 = vadd.f32 %v362_v5, %v111_v12  ;;  %v119_v14 = vsel %vm70_vm1, %v540_v10, 0.0 }
  0xd0   :  { %120 = vadd.xlane.f32.xlu0 %v119_v14  ;;  %v412_v15 = vpop.f32.mrf.mxu1 }
  0xd1   :  { %v544_v16 = vadd.f32 %v389_v11, %v112_v13 }
  0xd3   :  { %v122_v17 = vsel %vm70_vm1, %v544_v16, 0.0 }
  0xd4   :  { %123 = vadd.xlane.f32.xlu0 %v122_v17 }
 0x159   :  { %v121_v18 = vpop.xlane.xlu0 %120 }
 0x15a   :  { %v126_v19 = vmul.f32 0.03125, %v121_v18 }
 0x15c   :  { %v128_v20 = vsub.f32 %v540_v10, %v126_v19 }
 0x15d   :  { %v124_v21 = vpop.xlane.xlu0 %123 }
 0x15e   :  { %v127_v22 = vmul.f32 0.03125, %v124_v21  ;;  %v130_v23 = vmul.f32 %v128_v20, %v128_v20 }
 0x160   :  { %v129_v24 = vsub.f32 %v544_v16, %v127_v22  ;;  %v132_v25 = vsel %vm70_vm1, %v130_v23, 0.0 }
 0x161   :  { %133 = vadd.xlane.f32.xlu1 %v132_v25 }
 0x162   :  { %v131_v26 = vmul.f32 %v129_v24, %v129_v24 }
 0x164   :  { %v135_v27 = vsel %vm70_vm1, %v131_v26, 0.0 }
 0x165   :  { %136 = vadd.xlane.f32.xlu1 %v135_v27 }
 0x1ea   :  { %v134_v35 = vpop.xlane.xlu1 %133 }
 0x1eb   :  { %v138_v36 = vmul.f32 0.03125, %v134_v35 }
 0x1ed   :  { %v140_v37 = vadd.f32 1e-05, %v138_v36 }
 0x1ee   :  { %v137_v38 = vpop.xlane.xlu1 %136 }
 0x1ef   :  { %456 = vrsqrt.f32 %v140_v37  ;;  %v139_v39 = vmul.f32 0.03125, %v137_v38 }
 0x1f1   :  { %v141_v40 = vadd.f32 1e-05, %v139_v39 }
 0x1f3   :  { %458 = vrsqrt.f32 %v141_v40 }
 0x1fc   :  { %v457_v41 = vpop.eup %456 }
 0x1fd   :  { %v144_v42 = vmul.f32 %v457_v41, %v128_v20 }
 0x1ff   :  { %v152_v46 = vmul.f32 %v367_v43, %v144_v42 }
 0x200   :  { %v459_v44 = vpop.eup %458 }
 0x201   :  { %v145_v45 = vmul.f32 %v459_v44, %v129_v24  ;;  %v160_v49 = vadd.f32 %v368_v47, %v152_v46 }
 0x203   :  { %v153_v48 = vmul.f32 %v367_v43, %v145_v45 }
 0x205   :  { %v161_v50 = vadd.f32 %v368_v47, %v153_v48 }
 0x207   :  { %v162_v51 = vpack.c.bf16 %v161_v50, %v160_v49 }
 0x209   :  { %418 = vmatmul.mubr.msk.bf16.vlgmr.msra.gmra.mxu1 %vm70_vm1, %v162_v51 }
 0x2c9   :  { %v223_v56 = vpop.f32.mrf.mxu1 }
 0x2ca   :  { %v224_v58 = vadd.f32 %v369_v55, %v223_v56 }
 0x2cb   :  { %v419_v57 = vpop.f32.mrf.mxu1 }
 0x2cc   :  { %v230_v62 = vmax.f32 %v224_v58, 0.0 }
 0x2cd   :  { %v226_v59 = vpop.f32.mrf.mxu1 }
 0x2ce   :  { %v227_v60 = vadd.f32 %v369_v55, %v226_v59 }
 0x2cf   :  { %v420_v61 = vpop.f32.mrf.mxu1 }
 0x2d0   :  { %v231_v63 = vmax.f32 %v227_v60, 0.0 }
 0x2d2   :  { %v232_v1 = vpack.c.bf16 %v231_v63, %v230_v62 }
 0x2d4   :  { %438 = vmatmul.mubr.bf16.vlgmr.msra.gmra.mxu0 %v232_v1 }
 0x394   :  { %v338_v2 = vpop.f32.mrf.mxu0 }
 0x395   :  { %v339_v3 = vadd.f32 %v373_v0, %v338_v2 }
 0x396   :  { %v439_v4 = vpop.f32.mrf.mxu0 }
 0x397   :  { %v345_v5 = vadd.f32 %v339_v3, %v540_v10 }
 0x398   :  { %v341_v6 = vpop.f32.mrf.mxu0 }
 0x399   :  { %v384_v7 = vpack.c.bf16 %v345_v5, %v345_v5  ;;  %v342_v8 = vadd.f32 %v373_v0, %v341_v6 }
 0x39a   :  { %v440_v9 = vpop.f32.mrf.mxu0 }
 0x39b   :  { %356 = vst.msk [vmem:[%s621_s10] sm:$0xf] %vm355_vm2, %v384_v7  ;;  %v346_v11 = vadd.f32 %v342_v8, %v544_v16 }
 0x39d   :  { %v385_v12 = vpack.c.bf16 %v346_v11, %v346_v11 }
 0x39f   :  { %357 = vst.msk [vmem:[%s621_s10 + $0x4] sm:$0xf] %vm355_vm2, %v385_v12 }

// kernel: transformer_forward.8
= control target key start
LH: loop header
LB: loop body
LE: loop exit
PB: predicated region body
PF: predicated region fallthrough
CT: control target
= control target key end

     0   :  { %s800_s6 = smov 0   ;;  %s907_s0 = inlined_call_operand.vmem [shape: bf16[2,8,96], index: 0, kind: input, shape index: {}]   ;;  %s908_s1 = inlined_call_operand.vmem [shape: bf16[2,8,32], index: 1, kind: output, shape index: {}]  }
   0x1 LB: > { %s643_s7 = sadd.s32 4294967295, %s772_s6   ;;  %p647_p0 = scmp.ge.s32.totalorder %s772_s6, 1  ;;  %s772_s6 = sphi %s800_s6, %s11_s6  }
   0x2   : > { %p86_p1 = scmp.lt.s32.totalorder %s772_s6, 3 }
   0x4   : > { %p87_p2 = pnand %p647_p0, %p86_p1 }
   0x5   : > { %p104_p3 = scmp.lt.s32.totalorder (!%p87_p2), %s643_s7, 1  ;;  %s776_s12 = smov (!%p87_p2), 96  }
   0x6   : > { %90 = sbr.rel (%p87_p2) target bundleno = 1541 (0x605), region = 24  ;;  %s777_s13 = smov (!%p87_p2), 64  }
   0x7   : > { %s778_s14 = smov (!%p87_p2), 88   ;;  %s779_s15 = smov (!%p87_p2), 72  }
   0x8   : > { %s780_s16 = smov (!%p87_p2), 120   ;;  %s781_s17 = smov (!%p87_p2), 80  }
   0x9   : > { %s782_s18 = smov (!%p87_p2), 112   ;;  %s783_s19 = smov (!%p87_p2), 104  }
   0xa   : > { %s784_s20 = smov (!%p87_p2), 56   ;;  %s785_s21 = smov (!%p87_p2), 48  }
   0xb   : > { %v774_v0 = vmov 0.0   ;;  %vm775_vm0 = vmmov 0   ;;  %s910_s7 = smov (!%p104_p3, %s643_s7), 1  ;;  %vm124_vm1 = vcmask 64512   ;;  %v114_v5 = vlaneseq  ;;  %s786_s22 = smov 40  }
   0xc   : > { %677 = vmatprep.subr.bf16.mxu0 %v774_v0  ;;  %679 = vmatprep.mubr.msk.bf16.mxu0 %vm775_vm0, %v774_v0  ;;  %s648_s8 = sshll.u32 %s910_s7, 2  ;;  %vm190_vm3 = vcmask 1043456   ;;  %s787_s23 = smov 8   ;;  %vm583_vm4 = vcmask 130048   ;;  %vm585_vm5 = vcmask 195584   ;;  %vm588_vm6 = vcmask 257024  }
   0xd   : > { %683 = vmatprep.subr.bf16.mxu1 %v774_v0  ;;  %685 = vmatprep.mubr.msk.bf16.mxu1 %vm775_vm0, %v774_v0  ;;  %s107_s11 = scalar_lea.vmem %s907_s0, %s648_s8  ;;  %v832_v6 = vshrl.u32 %v114_v5, 7  ;;  %v834_v7 = vand.u32 127, %v114_v5  ;;  %s788_s24 = smov 16  }
   0xe   : > { %v113_v1 = vld [vmem:[%s107_s11] sm:$0xf]  ;;  %s789_s25 = smov 24   ;;  %s111_s28 = scalar_lea.vmem %s908_s1, %s648_s8 }
   0xf   : > { %v822_v2 = vcombine.low %v113_v1, %v113_v1  ;;  %vm118_vm2 = vcmp.ge.s32.totalorder %v832_v6, %v834_v7 }
  0x11   : > { %122 = vrot.lane.b32.xlu0 %v822_v2, %s776_s12  ;;  %185 = vrot.lane.b32.xlu1 %v822_v2, %s777_s13 }
  0x15   : > { %236 = vrot.lane.b32.xlu1 %v822_v2, %s778_s14 }
  0x83   : > { %v123_v3 = vpop.permute.xlu0 %122  ;;  %v186_v15 = vpop.permute.xlu1 %185 }
  0x84   : > { %v129_v4 = vsel %vm124_vm1, %v123_v3, 0  ;;  %v192_v16 = vsel %vm190_vm3, %v186_v15, 0 }
  0x85   : > { %678 = vmatpush3.bf16.xpose.msra.mxu0 %v129_v4  ;;  %684 = vmatpush3.bf16.msra.mxu1 %v192_v16 }
  0x86   : > { %695 = vmatprep.subr.bf16.mxu0 %v774_v0  ;;  %689 = vmatprep.subr.bf16.mxu1 %v774_v0 }
  0x87   : > { %v237_v22 = vpop.permute.xlu1 %236 }
  0x88   : > { %v242_v28 = vsel %vm124_vm1, %v237_v22, 0 }
  0x8c   : > { %680 = vmatmul.mubr.msk.bf16.vlgmr.msra.gmra.mxu0 %vm124_vm1, %v113_v1 }
  0x8d   : > { %697 = vmatprep.mubr.msk.bf16.mxu0 %vm775_vm0, %v774_v0 }
 0x14c   : > { %v165_v8 = vpop.f32.mrf.mxu0 }
 0x14d   : > { %v171_v9 = vmul.f32 0.35355338, %v165_v8 }
 0x14e   : > { %v681_v10 = vpop.f32.mrf.mxu0 }
 0x14f   : > { %v172_v11 = vsel %vm118_vm2, %v171_v9, -inf }
 0x150   : > { %v168_v12 = vpop.f32.mrf.mxu0  ;;  %v173_v13 = vsel %vm124_vm1, %v172_v11, -inf }
 0x151   : > { %174 = vmax.xlane.f32.xlu0 %v173_v13 }
 0x152   : > { %v682_v14 = vpop.f32.mrf.mxu0 }
 0x167   : > { %460 = vrot.lane.b32.xlu0 %v822_v2, %s779_s15 }
 0x1da   : > { %v175_v17 = vpop.xlane.xlu0 %174 }
 0x1db   : > { %v176_v18 = vsub.f32 %v172_v11, %v175_v17 }
 0x1dd   : > { %v177_v19 = vmul.f32 1.442695, %v176_v18 }
 0x1de   : > { %v461_v31 = vpop.permute.xlu0 %460 }
 0x1df   : > { %750 = vpow2.f32 %v177_v19  ;;  %v466_v33 = vsel %vm124_vm1, %v461_v31, 0 }
 0x1ec   : > { %v751_v20 = vpop.eup %750 }
 0x1ed   : > { %v179_v21 = vsel %vm124_vm1, %v751_v20, 0.0 }
 0x1ee   : > { %180 = vadd.xlane.f32.xlu1 %v179_v21 }
 0x1ff   : > { %234 = vrot.lane.b32.xlu1 %v822_v2, %s780_s16 }
 0x203   : > { %348 = vrot.lane.b32.xlu1 %v822_v2, %s781_s17 }
 0x207   : > { %346 = vrot.lane.b32.xlu1 %v822_v2, %s782_s18 }
 0x20b   : > { %458 = vrot.lane.b32.xlu1 %v822_v2, %s783_s19 }
 0x277   : > { %v181_v23 = vpop.xlane.xlu1 %180 }
 0x278   : > { %752 = vrcp.f32 %v181_v23 }
 0x27b   : > { %v235_v26 = vpop.permute.xlu1 %234 }
 0x27f   : > { %v349_v29 = vpop.permute.xlu1 %348 }
 0x280   : > { %v354_v30 = vsel %vm124_vm1, %v349_v29, 0 }
 0x283   : > { %v347_v32 = vpop.permute.xlu1 %346 }
 0x285   : > { %v753_v24 = vpop.eup %752 }
 0x286   : > { %v183_v25 = vmul.f32 %v753_v24, %v751_v20 }
 0x287   : > { %v459_v34 = vpop.permute.xlu1 %458 }
 0x288   : > { %v184_v27 = vpack.c.bf16 %v183_v25, %v183_v25 }
 0x28a   : > { %686 = vmatmul.mubr.msk.bf16.vlgmr.msra.gmra.mxu1 %vm124_vm1, %v184_v27 }
 0x28b   : > { %690 = vmatpush3.bf16.xpose.msra.mxu1 %v242_v28  ;;  %691 = vmatprep.mubr.msk.bf16.mxu1 %vm775_vm0, %v774_v0 }
 0x28c   : > { %701 = vmatprep.subr.bf16.mxu1 %v774_v0 }
 0x292   : > { %692 = vmatmul.mubr.msk.bf16.vlgmr.msra.gmra.mxu1 %vm124_vm1, %v235_v26 }
 0x293   : > { %702 = vmatpush3.bf16.xpose.msra.mxu1 %v354_v30  ;;  %703 = vmatprep.mubr.msk.bf16.mxu1 %vm775_vm0, %v774_v0 }
 0x294   : > { %713 = vmatprep.subr.bf16.mxu1 %v774_v0 }
 0x29a   : > { %704 = vmatmul.mubr.msk.bf16.vlgmr.msra.gmra.mxu1 %vm124_vm1, %v347_v32 }
 0x29b   : > { %714 = vmatpush3.bf16.xpose.msra.mxu1 %v466_v33  ;;  %715 = vmatprep.mubr.msk.bf16.mxu1 %vm775_vm0, %v774_v0 }
 0x2a2   : > { %716 = vmatmul.mubr.msk.bf16.vlgmr.msra.gmra.mxu1 %vm124_vm1, %v459_v34 }
 0x34a   : > { %v865_v35 = vpop.f32.mrf.mxu1 }
 0x34c   : > { %v687_v36 = vpop.f32.mrf.mxu1 }
 0x34e   : > { %v231_v37 = vpop.f32.mrf.mxu1 }
 0x350   : > { %v688_v38 = vpop.f32.mrf.mxu1 }
 0x352   : > { %v278_v39 = vpop.f32.mrf.mxu1 }
 0x353   : > { %v284_v40 = vmul.f32 0.35355338, %v278_v39 }
 0x354   : > { %v693_v41 = vpop.f32.mrf.mxu1 }
 0x355   : > { %v285_v42 = vsel %vm118_vm2, %v284_v40, -inf }
 0x356   : > { %v281_v43 = vpop.f32.mrf.mxu1  ;;  %v286_v44 = vsel %vm124_vm1, %v285_v42, -inf }
 0x357   : > { %287 = vmax.xlane.f32.xlu1 %v286_v44 }
 0x358   : > { %v694_v45 = vpop.f32.mrf.mxu1 }
 0x35a   : > { %v390_v46 = vpop.f32.mrf.mxu1 }
 0x35b   : > { %v396_v47 = vmul.f32 0.35355338, %v390_v46 }
 0x35c   : > { %v705_v48 = vpop.f32.mrf.mxu1 }
 0x35d   : > { %v397_v49 = vsel %vm118_vm2, %v396_v47, -inf }
 0x35e   : > { %v393_v50 = vpop.f32.mrf.mxu1  ;;  %v398_v51 = vsel %vm124_vm1, %v397_v49, -inf }
 0x35f   : > { %399 = vmax.xlane.f32.xlu0 %v398_v51 }
 0x360   : > { %v706_v52 = vpop.f32.mrf.mxu1 }
 0x362   : > { %v502_v53 = vpop.f32.mrf.mxu1 }
 0x363   : > { %v508_v54 = vmul.f32 0.35355338, %v502_v53 }
 0x364   : > { %v717_v55 = vpop.f32.mrf.mxu1 }
 0x365   : > { %v509_v56 = vsel %vm118_vm2, %v508_v54, -inf }
 0x366   : > { %v510_v57 = vsel %vm124_vm1, %v509_v56, -inf  ;;  %v505_v58 = vpop.f32.mrf.mxu1 }
 0x367   : > { %511 = vmax.xlane.f32.xlu1 %v510_v57 }
 0x368   : > { %v718_v59 = vpop.f32.mrf.mxu1 }
 0x3e0   : > { %v288_v60 = vpop.xlane.xlu1 %287 }
 0x3e1   : > { %v289_v61 = vsub.f32 %v285_v42, %v288_v60 }
 0x3e3   : > { %v290_v62 = vmul.f32 1.442695, %v289_v61 }
 0x3e5   : > { %754 = vpow2.f32 %v290_v62 }
 0x3e8   : > { %v400_v7 = vpop.xlane.xlu0 %399 }
 0x3e9   : > { %v401_v9 = vsub.f32 %v397_v49, %v400_v7 }
 0x3eb   : > { %v402_v10 = vmul.f32 1.442695, %v401_v9 }
 0x3f0   : > { %v512_v63 = vpop.xlane.xlu1 %511 }
 0x3f1   : > { %v513_v1 = vsub.f32 %v509_v56, %v512_v63 }
 0x3f2   : > { %v755_v3 = vpop.eup %754 }
 0x3f3   : > { %v514_v4 = vmul.f32 1.442695, %v513_v1  ;;  %v292_v5 = vsel %vm124_vm1, %v755_v3, 0.0 }
 0x3f4   : > { %293 = vadd.xlane.f32.xlu1 %v292_v5 }
 0x3f5   : > { %756 = vpow2.f32 %v514_v4 }
 0x3f6   : > { %758 = vpow2.f32 %v402_v10 }
 0x402   : > { %v757_v8 = vpop.eup %756 }
 0x403   : > { %v516_v6 = vsel %vm124_vm1, %v757_v8, 0.0  ;;  %v759_v11 = vpop.eup %758 }
 0x404   : > { %517 = vadd.xlane.f32.xlu0 %v516_v6  ;;  %v404_v12 = vsel %vm124_vm1, %v759_v11, 0.0 }
 0x405   : > { %298 = vrot.lane.b32.xlu1 %v822_v2, %s784_s20 }
 0x41a   : > { %410 = vrot.lane.b32.xlu0 %v822_v2, %s785_s21 }
 0x429   : > { %405 = vadd.xlane.f32.xlu1 %v404_v12 }
 0x43a   : > { %522 = vrot.lane.b32.xlu1 %v822_v2, %s786_s22 }
 0x47d   : > { %v294_v13 = vpop.xlane.xlu1 %293 }
 0x47e   : > { %760 = vrcp.f32 %v294_v13 }
 0x481   : > { %v299_v14 = vpop.permute.xlu1 %298 }
 0x482   : > { %v304_v15 = vsel %vm190_vm3, %v299_v14, 0 }
 0x483   : > { %696 = vmatpush3.bf16.msra.mxu0 %v304_v15 }
 0x484   : > { %707 = vmatprep.subr.bf16.mxu0 %v774_v0 }
 0x48b   : > { %v761_v16 = vpop.eup %760 }
 0x48c   : > { %v296_v17 = vmul.f32 %v761_v16, %v755_v3 }
 0x48d   : > { %v518_v18 = vpop.xlane.xlu0 %517 }
 0x48e   : > { %v297_v19 = vpack.c.bf16 %v296_v17, %v296_v17 }
 0x490   : > { %698 = vmatmul.mubr.msk.bf16.vlgmr.msra.gmra.mxu0 %vm124_vm1, %v297_v19 }
 0x491   : > { %v411_v20 = vpop.permute.xlu0 %410  ;;  %709 = vmatprep.mubr.msk.bf16.mxu0 %vm775_vm0, %v774_v0 }
 0x492   : > { %v416_v2 = vsel %vm190_vm3, %v411_v20, 0 }
 0x493   : > { %708 = vmatpush3.bf16.msra.mxu0 %v416_v2 }
 0x494   : > { %719 = vmatprep.subr.bf16.mxu0 %v774_v0 }
 0x4b2   : > { %v406_v21 = vpop.xlane.xlu1 %405 }
 0x4b3   : > { %762 = vrcp.f32 %v406_v21 }
 0x4b4   : > { %764 = vrcp.f32 %v518_v18 }
 0x4b6   : > { %v523_v23 = vpop.permute.xlu1 %522 }
 0x4b7   : > { %v528_v25 = vsel %vm190_vm3, %v523_v23, 0 }
 0x4c0   : > { %v763_v22 = vpop.eup %762 }
 0x4c1   : > { %v408_v24 = vmul.f32 %v763_v22, %v759_v11  ;;  %v765_v27 = vpop.eup %764 }
 0x4c2   : > { %v520_v28 = vmul.f32 %v765_v27, %v757_v8 }
 0x4c3   : > { %v409_v26 = vpack.c.bf16 %v408_v24, %v408_v24 }
 0x4c4   : > { %v521_v29 = vpack.c.bf16 %v520_v28, %v520_v28 }
 0x4c5   : > { %710 = vmatmul.mubr.msk.bf16.vlgmr.msra.gmra.mxu0 %vm124_vm1, %v409_v26 }
 0x4c6   : > { %720 = vmatpush3.bf16.msra.mxu0 %v528_v25  ;;  %721 = vmatprep.mubr.msk.bf16.mxu0 %vm775_vm0, %v774_v0 }
 0x4cd   : > { %722 = vmatmul.mubr.msk.bf16.vlgmr.msra.gmra.mxu0 %vm124_vm1, %v521_v29 }
 0x550   : > { %v340_v30 = vpop.f32.mrf.mxu0 }
 0x551   : > { %571 = vrot.lane.b32.xlu1 %v340_v30, %s787_s23 }
 0x552   : > { %v699_v31 = vpop.f32.mrf.mxu0 }
 0x554   : > { %v343_v32 = vpop.f32.mrf.mxu0 }
 0x556   : > { %v700_v33 = vpop.f32.mrf.mxu0 }
 0x585   : > { %v452_v34 = vpop.f32.mrf.mxu0 }
 0x586   : > { %575 = vrot.lane.b32.xlu0 %v452_v34, %s788_s24 }
 0x587   : > { %v711_v36 = vpop.f32.mrf.mxu0 }
 0x589   : > { %v455_v37 = vpop.f32.mrf.mxu0 }
 0x58b   : > { %v712_v38 = vpop.f32.mrf.mxu0 }
 0x58d   : > { %v564_v39 = vpop.f32.mrf.mxu0 }
 0x58e   : > { %579 = vrot.lane.b32.xlu1 %v564_v39, %s789_s25 }
 0x58f   : > { %v723_v0 = vpop.f32.mrf.mxu0 }
 0x591   : > { %v567_v40 = vpop.f32.mrf.mxu0 }
 0x593   : > { %v724_v41 = vpop.f32.mrf.mxu0 }
 0x5c3   : > { %v572_v42 = vpop.permute.xlu1 %571 }
 0x5c4   : > { %v582_v44 = vsel %vm124_vm1, %v865_v35, %v572_v42 }
 0x5f8   : > { %v576_v43 = vpop.permute.xlu0 %575 }
 0x5f9   : > { %v584_v45 = vsel %vm583_vm4, %v582_v44, %v576_v43 }
 0x600   : > { %v580_v46 = vpop.permute.xlu1 %579 }
 0x601   : > { %v586_v47 = vsel %vm585_vm5, %v584_v45, %v580_v46 }
 0x602   : > { %v587_v48 = vpack.c.bf16 %v586_v47, %v586_v47 }
 0x604   : > { %589 = vst.msk [vmem:[%s111_s28] sm:$0xf] %vm588_vm6, %v587_v48 }
 0x605 PF: > { %s11_s6 = sadd.s32 1, %s772_s6  }
 0x606   : > { %p8_p4 = scmp.ge.s32.totalorder %s11_s6, 4  }
 0x608   :  { %10 = sbr.rel (!%p8_p4) target bundleno = 1 (0x1), region = 54 }

// kernel: transformer_forward.13
= control target key start
LH: loop header
LB: loop body
LE: loop exit
PB: predicated region body
PF: predicated region fallthrough
CT: control target
= control target key end

     0   :  { %v155_v1 = vmov 0.0   ;;  %vm156_vm0 = vmmov 0   ;;  %s195_s0 = inlined_call_operand.vmem [shape: bf16[16,32], index: 0, kind: input, shape index: {}]   ;;  %s196_s1 = inlined_call_operand.vmem [shape: bf16[32,128], index: 1, kind: input, shape index: {}]   ;;  %s197_s2 = inlined_call_operand.vmem [shape: f32[1,128], index: 2, kind: input, shape index: {}]   ;;  %s198_s3 = inlined_call_operand.hbm [shape: f32[16,128], index: 3, kind: output, shape index: {}]  }
   0x1   :  { %v130_v0 = vld [vmem:[%s196_s1 + $0x8] sm:$0xff]   ;;  %117 = vmatprep.subr.bf16.mxu0 %v155_v1  ;;  %v131_v2 = vld [vmem:[%s196_s1] sm:$0xff]   ;;  %121 = vmatprep.mubr.msk.bf16.mxu0 %vm156_vm0, %v155_v1 }
   0x2   :  { %118 = vmatpush3.bf16.msra.mxu0 %v130_v0 }
   0x3   :  { %119 = vmatprep.subr.bf16.mxu0 %v155_v1 }
   0x4   :  { %8 = vsyncpa [#allocation3], 0  ;;  %v132_v3 = vld [vmem:[%s195_s0] sm:$0xff]   ;;  %vm46_vm1 = vcmask 261120   ;;  %s157_s20 = smov [#allocation2]  }
   0x5   :  { %v109_v4 = vld [vmem:[%s197_s2] ss:$0 sm:$0xff]  ;;  %s98_s21 = sshll.u32 %s157_s20, 4  ;;  %s99_s21 = int_to_ptr.vmem [resolvable:$true] %s98_s21 }
   0x6   :  { %120 = vmatpush3.bf16.msra.mxu0 %v131_v2  ;;  %s133_s1 = scalar_lea.vmem %s99_s21, 256  ;;  %p138_p1 = scmp.lt.s32.totalorder %s99_s21, %s99_s21 }
   0x7   :  { %p134_p0 = scmp.ne.s32.totalorder %s99_s21, %s133_s1  ;;  %p139_p2 = scmp.lt.s32.totalorder %s133_s1, %s133_s1 }
   0x9   :  { %122 = vmatmul.mubr.msk.bf16.vlgmr.msra.gmra.mxu0 %vm46_vm1, %v132_v3  ;;  %p140_p3 = por %p139_p2, %p138_p1 }
   0xb   :  { %p141_p4 = pnand %p140_p3, %p134_p0 }
  0xc9   :  { %v84_v5 = vpop.f32.mrf.mxu0 }
  0xca   :  { %v85_v6 = vadd.f32 %v109_v4, %v84_v5 }
  0xcb   :  { %v123_v7 = vpop.f32.mrf.mxu0 }
  0xcc   :  { %91 = vst [vmem:[#allocation2] sm:$0xff] %v85_v6 }
  0xcd   :  { %v87_v8 = vpop.f32.mrf.mxu0 }
  0xce   :  { %v88_v9 = vadd.f32 %v109_v4, %v87_v8 }
  0xcf   :  { %v124_v10 = vpop.f32.mrf.mxu0 }
  0xd0   :  { %92 = vst [vmem:[#allocation2 + $0x8] sm:$0xff] %v88_v9 }
  0xd1   :  { %144 = shalt.err (!%p141_p4)
}
  0xd2   :  { %s158_s0 = smov 128   ;;  %s159_s2 = smov 8  }
  0xd3   :  { %104 = dma.vmem_to_hbm [thread:$0]  %s99_s21, 256, %s198_s3, [#allocation3], %s158_s0, %s158_s0, %s159_s2  }
  0xd4   :  { %153 = dma.done.wait [#allocation3], 256  }
  0xd5   :  { %154 = vsyncadd [#allocation3], 4294967040 }
  0xd6   :  { %108 = vsyncpa [#allocation3], 1 }

// kernel: transformer_forward.12
= control target key start
LH: loop header
LB: loop body
LE: loop exit
PB: predicated region body
PF: predicated region fallthrough
CT: control target
= control target key end

     0   :  { %v516_v0 = vmov 0.0   ;;  %vm517_vm0 = vmmov 0   ;;  %vm76_vm1 = vcmask 261120   ;;  %vm405_vm2 = vcmask 257024   ;;  %s687_s2 = inlined_call_operand.vmem [shape: bf16[32,32], index: 2, kind: input, shape index: {}]   ;;  %s688_s0 = inlined_call_operand.vmem [shape: bf16[16,32], index: 0, kind: input, shape index: {}]   ;;  %s689_s1 = inlined_call_operand.vmem [shape: bf16[16,32], index: 1, kind: input, shape index: {}]   ;;  %s690_s3 = inlined_call_operand.vmem [shape: f32[1,32], index: 3, kind: input, shape index: {}]   ;;  %s691_s6 = inlined_call_operand.vmem [shape: bf16[32,128], index: 6, kind: input, shape index: {}]   ;;  %s692_s8 = inlined_call_operand.vmem [shape: bf16[128,32], index: 8, kind: input, shape index: {}]   ;;  %s693_s4 = inlined_call_operand.vmem [shape: f32[1,32], index: 4, kind: input, shape index: {}]   ;;  %s694_s5 = inlined_call_operand.vmem [shape: f32[1,32], index: 5, kind: input, shape index: {}]   ;;  %s695_s7 = inlined_call_operand.vmem [shape: f32[1,128], index: 7, kind: input, shape index: {}]   ;;  %s696_s9 = inlined_call_operand.vmem [shape: f32[1,32], index: 9, kind: input, shape index: {}]   ;;  %s697_s10 = inlined_call_operand.vmem [shape: f32[1,32], index: 10, kind: input, shape index: {}]   ;;  %s698_s11 = inlined_call_operand.vmem [shape: f32[1,32], index: 11, kind: input, shape index: {}]   ;;  %s699_s12 = inlined_call_operand.vmem [shape: bf16[16,32], index: 12, kind: output, shape index: {}]  }
   0x1   :  { %457 = vmatprep.subr.bf16.mxu1 %v516_v0  ;;  %v495_v1 = vld [vmem:[%s687_s2 + $0x8] sm:$0xff]   ;;  %461 = vmatprep.mubr.msk.bf16.mxu1 %vm517_vm0, %v516_v0  ;;  %v496_v2 = vld [vmem:[%s687_s2] sm:$0xff]   ;;  %v500_v30 = vld [vmem:[%s692_s8 + $0x38] sm:$0xff]  }
   0x2   :  { %473 = vmatprep.subr.bf16.mxu0 %v516_v0  ;;  %489 = vmatprep.mubr.msk.bf16.mxu0 %vm517_vm0, %v516_v0  ;;  %v497_v3 = vld [vmem:[%s688_s0] sm:$0xff]   ;;  %v498_v28 = vld [vmem:[%s691_s6 + $0x8] sm:$0xff]   ;;  %v501_v31 = vld [vmem:[%s692_s8 + $0x30] sm:$0xff]  }
   0x3   :  { %458 = vmatpush3.bf16.msra.mxu1 %v495_v1  ;;  %v439_v4 = vld [vmem:[%s689_s1] sm:$0xff]   ;;  %474 = vmatpush3.bf16.msra.mxu0 %v500_v30  ;;  %v502_v32 = vld [vmem:[%s692_s8 + $0x28] sm:$0xff]   ;;  %v504_v34 = vld [vmem:[%s692_s8 + $0x18] sm:$0xff]  }
   0x4   :  { %459 = vmatprep.subr.bf16.mxu1 %v516_v0  ;;  %v412_v5 = vld [vmem:[%s690_s3] ss:$0 sm:$0xff]  ;;  %v440_v6 = vunpack.c.l.bf16 %v439_v4  ;;  %v441_v11 = vunpack.c.h.bf16 %v439_v4  ;;  %475 = vmatprep.subr.bf16.mxu0 %v516_v0  ;;  %v505_v52 = vld [vmem:[%s692_s8 + $0x10] sm:$0xff]   ;;  %v506_v53 = vld [vmem:[%s692_s8 + $0x8] sm:$0xff]  }
   0x5   :  { %v499_v29 = vld [vmem:[%s691_s6] sm:$0xff]  }
   0x6   :  { %v503_v33 = vld [vmem:[%s692_s8 + $0x20] sm:$0xff]  }
   0x7   :  { %460 = vmatpush3.bf16.msra.mxu1 %v496_v2  ;;  %476 = vmatpush3.bf16.msra.mxu0 %v501_v31  ;;  %v417_v43 = vld [vmem:[%s693_s4] ss:$0 sm:$0xff] }
   0x8   :  { %465 = vmatprep.subr.bf16.mxu1 %v516_v0  ;;  %477 = vmatprep.subr.bf16.mxu0 %v516_v0  ;;  %v418_v47 = vld [vmem:[%s694_s5] ss:$0 sm:$0xff] }
   0x9   :  { %v507_v54 = vld [vmem:[%s692_s8] sm:$0xff]  }
   0xa   :  { %462 = vmatmul.mubr.msk.bf16.vlgmr.msra.gmra.mxu1 %vm76_vm1, %v497_v3  ;;  %v419_v55 = vld [vmem:[%s695_s7] ss:$0 sm:$0xff] }
   0xb   :  { %469 = vmatprep.mubr.msk.bf16.mxu1 %vm517_vm0, %v516_v0  ;;  %466 = vmatpush3.bf16.msra.mxu1 %v498_v28  ;;  %v433_v31 = vld [vmem:[%s698_s11] ss:$0 sm:$0xff] }
   0xc   :  { %467 = vmatprep.subr.bf16.mxu1 %v516_v0  ;;  %478 = vmatpush3.bf16.msra.mxu0 %v502_v32 }
   0xd   :  { %479 = vmatprep.subr.bf16.mxu0 %v516_v0 }
   0xf   :  { %468 = vmatpush3.bf16.msra.mxu1 %v499_v29  ;;  %v432_v29 = vld [vmem:[%s697_s10] ss:$0 sm:$0xff] }
  0x10   :  { %480 = vmatpush3.bf16.msra.mxu0 %v503_v33 }
  0x11   :  { %481 = vmatprep.subr.bf16.mxu0 %v516_v0 }
  0x14   :  { %482 = vmatpush3.bf16.msra.mxu0 %v504_v34 }
  0x15   :  { %483 = vmatprep.subr.bf16.mxu0 %v516_v0 }
  0x18   :  { %484 = vmatpush3.bf16.msra.mxu0 %v505_v52 }
  0x19   :  { %485 = vmatprep.subr.bf16.mxu0 %v516_v0 }
  0x1c   :  { %486 = vmatpush3.bf16.msra.mxu0 %v506_v53 }
  0x1d   :  { %487 = vmatprep.subr.bf16.mxu0 %v516_v0  ;;  %v423_v0 = vld [vmem:[%s696_s9] ss:$0 sm:$0xff] }
  0x20   :  { %488 = vmatpush3.bf16.msra.mxu0 %v507_v54 }
  0xca   :  { %v114_v7 = vpop.f32.mrf.mxu1 }
  0xcb   :  { %v115_v8 = vadd.f32 %v412_v5, %v114_v7 }
  0xcc   :  { %v463_v9 = vpop.f32.mrf.mxu1 }
  0xcd   :  { %v606_v10 = vadd.f32 %v440_v6, %v115_v8 }
  0xce   :  { %v117_v12 = vpop.f32.mrf.mxu1 }
  0xcf   :  { %v118_v13 = vadd.f32 %v412_v5, %v117_v12  ;;  %v125_v14 = vsel %vm76_vm1, %v606_v10, 0.0 }
  0xd0   :  { %126 = vadd.xlane.f32.xlu0 %v125_v14  ;;  %v464_v15 = vpop.f32.mrf.mxu1 }
  0xd1   :  { %v610_v16 = vadd.f32 %v441_v11, %v118_v13 }
  0xd3   :  { %v128_v17 = vsel %vm76_vm1, %v610_v16, 0.0 }
  0xd4   :  { %129 = vadd.xlane.f32.xlu0 %v128_v17 }
 0x159   :  { %v127_v18 = vpop.xlane.xlu0 %126 }
 0x15a   :  { %v132_v19 = vmul.f32 0.03125, %v127_v18 }
 0x15c   :  { %v134_v20 = vsub.f32 %v606_v10, %v132_v19 }
 0x15d   :  { %v130_v21 = vpop.xlane.xlu0 %129 }
 0x15e   :  { %v133_v22 = vmul.f32 0.03125, %v130_v21  ;;  %v136_v23 = vmul.f32 %v134_v20, %v134_v20 }
 0x160   :  { %v135_v24 = vsub.f32 %v610_v16, %v133_v22  ;;  %v138_v25 = vsel %vm76_vm1, %v136_v23, 0.0 }
 0x161   :  { %139 = vadd.xlane.f32.xlu1 %v138_v25 }
 0x162   :  { %v137_v26 = vmul.f32 %v135_v24, %v135_v24 }
 0x164   :  { %v141_v27 = vsel %vm76_vm1, %v137_v26, 0.0 }
 0x165   :  { %142 = vadd.xlane.f32.xlu1 %v141_v27 }
 0x1ea   :  { %v140_v35 = vpop.xlane.xlu1 %139 }
 0x1eb   :  { %v144_v36 = vmul.f32 0.03125, %v140_v35 }
 0x1ed   :  { %v146_v37 = vadd.f32 1e-05, %v144_v36 }
 0x1ee   :  { %v143_v38 = vpop.xlane.xlu1 %142 }
 0x1ef   :  { %508 = vrsqrt.f32 %v146_v37  ;;  %v145_v39 = vmul.f32 0.03125, %v143_v38 }
 0x1f1   :  { %v147_v40 = vadd.f32 1e-05, %v145_v39 }
 0x1f3   :  { %510 = vrsqrt.f32 %v147_v40 }
 0x1fc   :  { %v509_v41 = vpop.eup %508 }
 0x1fd   :  { %v150_v42 = vmul.f32 %v509_v41, %v134_v20 }
 0x1ff   :  { %v158_v46 = vmul.f32 %v417_v43, %v150_v42 }
 0x200   :  { %v511_v44 = vpop.eup %510 }
 0x201   :  { %v151_v45 = vmul.f32 %v511_v44, %v135_v24  ;;  %v166_v49 = vadd.f32 %v418_v47, %v158_v46 }
 0x203   :  { %v159_v48 = vmul.f32 %v417_v43, %v151_v45 }
 0x205   :  { %v167_v50 = vadd.f32 %v418_v47, %v159_v48 }
 0x207   :  { %v168_v51 = vpack.c.bf16 %v167_v50, %v166_v49 }
 0x209   :  { %470 = vmatmul.mubr.msk.bf16.vlgmr.msra.gmra.mxu1 %vm76_vm1, %v168_v51 }
 0x2c9   :  { %v229_v56 = vpop.f32.mrf.mxu1 }
 0x2ca   :  { %v230_v58 = vadd.f32 %v419_v55, %v229_v56 }
 0x2cb   :  { %v471_v57 = vpop.f32.mrf.mxu1 }
 0x2cc   :  { %v236_v62 = vmax.f32 %v230_v58, 0.0 }
 0x2cd   :  { %v232_v59 = vpop.f32.mrf.mxu1 }
 0x2ce   :  { %v233_v60 = vadd.f32 %v419_v55, %v232_v59 }
 0x2cf   :  { %v472_v61 = vpop.f32.mrf.mxu1 }
 0x2d0   :  { %v237_v63 = vmax.f32 %v233_v60, 0.0 }
 0x2d2   :  { %v238_v1 = vpack.c.bf16 %v237_v63, %v236_v62 }
 0x2d4   :  { %490 = vmatmul.mubr.bf16.vlgmr.msra.gmra.mxu0 %v238_v1 }
 0x394   :  { %v344_v2 = vpop.f32.mrf.mxu0 }
 0x395   :  { %v345_v3 = vadd.f32 %v423_v0, %v344_v2 }
 0x396   :  { %v491_v4 = vpop.f32.mrf.mxu0 }
 0x397   :  { %v351_v5 = vadd.f32 %v345_v3, %v606_v10 }
 0x398   :  { %v347_v6 = vpop.f32.mrf.mxu0 }
 0x399   :  { %v348_v7 = vadd.f32 %v423_v0, %v347_v6  ;;  %v355_v8 = vsel %vm76_vm1, %v351_v5, 0.0 }
 0x39a   :  { %356 = vadd.xlane.f32.xlu0 %v355_v8  ;;  %v492_v9 = vpop.f32.mrf.mxu0 }
 0x39b   :  { %v352_v11 = vadd.f32 %v348_v7, %v610_v16 }
 0x39d   :  { %v358_v12 = vsel %vm76_vm1, %v352_v11, 0.0 }
 0x39e   :  { %359 = vadd.xlane.f32.xlu1 %v358_v12 }
 0x423   :  { %v357_v13 = vpop.xlane.xlu0 %356 }
 0x424   :  { %v361_v14 = vmul.f32 0.03125, %v357_v13 }
 0x426   :  { %v363_v15 = vsub.f32 %v351_v5, %v361_v14 }
 0x427   :  { %v360_v17 = vpop.xlane.xlu1 %359 }
 0x428   :  { %v362_v18 = vmul.f32 0.03125, %v360_v17  ;;  %v365_v19 = vmul.f32 %v363_v15, %v363_v15 }
 0x42a   :  { %v364_v20 = vsub.f32 %v352_v11, %v362_v18  ;;  %v367_v10 = vsel %vm76_vm1, %v365_v19, 0.0 }
 0x42b   :  { %368 = vadd.xlane.f32.xlu0 %v367_v10 }
 0x42c   :  { %v366_v21 = vmul.f32 %v364_v20, %v364_v20 }
 0x42e   :  { %v370_v22 = vsel %vm76_vm1, %v366_v21, 0.0 }
 0x42f   :  { %371 = vadd.xlane.f32.xlu1 %v370_v22 }
 0x4b4   :  { %v369_v23 = vpop.xlane.xlu0 %368 }
 0x4b5   :  { %v373_v24 = vmul.f32 0.03125, %v369_v23 }
 0x4b7   :  { %v375_v16 = vadd.f32 1e-05, %v373_v24 }
 0x4b8   :  { %v372_v25 = vpop.xlane.xlu1 %371 }
 0x4b9   :  { %512 = vrsqrt.f32 %v375_v16  ;;  %v374_v26 = vmul.f32 0.03125, %v372_v25 }
 0x4bb   :  { %v376_v27 = vadd.f32 1e-05, %v374_v26 }
 0x4bd   :  { %514 = vrsqrt.f32 %v376_v27 }
 0x4c6   :  { %v513_v28 = vpop.eup %512 }
 0x4c7   :  { %v379_v30 = vmul.f32 %v513_v28, %v363_v15 }
 0x4c9   :  { %v387_v32 = vmul.f32 %v432_v29, %v379_v30 }
 0x4ca   :  { %v515_v33 = vpop.eup %514 }
 0x4cb   :  { %v395_v34 = vadd.f32 %v433_v31, %v387_v32  ;;  %v380_v35 = vmul.f32 %v515_v33, %v364_v20 }
 0x4cd   :  { %v436_v36 = vpack.c.bf16 %v395_v34, %v395_v34  ;;  %v388_v37 = vmul.f32 %v432_v29, %v380_v35 }
 0x4cf   :  { %406 = vst.msk [vmem:[%s699_s12] sm:$0xf] %vm405_vm2, %v436_v36  ;;  %v396_v38 = vadd.f32 %v433_v31, %v388_v37 }
 0x4d1   :  { %v437_v39 = vpack.c.bf16 %v396_v38, %v396_v38 }
 0x4d3   :  { %407 = vst.msk [vmem:[%s699_s12 + $0x4] sm:$0xf] %vm405_vm2, %v437_v39 }

</bundles_post_ra>
